<compile_context>
chip_gen: v6e
topology: v6e:2x2x1
jax: 0.10.0
libtpu: 0.0.40
codegen_flags: <defaults>
</compile_context>

<pallas_src>
import jax
import jax.numpy as jnp
from jax import lax
from jax.experimental import pallas as pl
from jax.experimental.pallas import tpu as pltpu

# ---------------- model dims ----------------
INPUT_SIZE = 16
HIDDEN1 = 64          # LSTM hidden size
HIDDEN2 = 32          # fc1 output / bn1 features
OUTPUT_SIZE = 1
BN_EPS = 1e-5
LEAKY_SLOPE = 0.1     # module uses nn.LeakyReLU(0.1)
B_TILE = 128          # default batch rows per grid step (large batches)


def _round_up(n, m):
    return ((n + m - 1) // m) * m


def _lstm_mlp_kernel(x_ref,      # (T*Bt, I)      bf16
                     wih_ref,    # (I, 4H)        bf16
                     whh_ref,    # (H, 4H)        bf16
                     b_ref,      # (1, 4H)        f32   (b_ih + b_hh)
                     w1_ref,     # (H, H2)        bf16  (BN folded in)
                     b1_ref,     # (1, H2)        f32   (BN folded in)
                     w2_ref,     # (1, H2)        f32
                     b2_ref,     # (1, 1)         f32
                     out_ref,    # (1, Bt)        f32   (lane-dense, batch on lanes)
                     xg_ref,     # (T*Bt, 4H)     f32 scratch
                     h_ref,      # (Bt, H)        bf16 scratch (recurrent state)
                     c_ref):     # (Bt, H)        f32  scratch (cell state)
    Bt = h_ref.shape[0]
    H = h_ref.shape[1]
    T = x_ref.shape[0] // Bt

    # Hoisted input projection + fused bias for ALL timesteps: one MXU matmul.
    xg_ref[...] = (
        jnp.dot(x_ref[...], wih_ref[...], preferred_element_type=jnp.float32)
        + b_ref[...]
    )

    # Recurrent state lives in VMEM scratch (no big fori_loop carries).
    h_ref[...] = jnp.zeros_like(h_ref)
    c_ref[...] = jnp.zeros_like(c_ref)

    # Interleave independent batch sub-tiles so one sub-tile's matmul overlaps
    # the other's transcendentals.
    n_sub = 2 if (Bt >= 64 and Bt % 16 == 0) else 1
    sub = Bt // n_sub

    def step(t, carry):
        row0 = pl.multiple_of(t * Bt, 8)
        for s in range(n_sub):
            r0 = s * sub                                  # static offset
            h = h_ref[pl.ds(r0, sub), :]                  # (sub, H) bf16
            c = c_ref[pl.ds(r0, sub), :]                  # (sub, H) f32
            gates = xg_ref[pl.ds(row0 + r0, sub), :] + jnp.dot(
                h, whh_ref[...], preferred_element_type=jnp.float32
            )                                             # (sub, 4H) f32
            # Gate order [i, f, g, o]; lane slicing is cheap (XLU/VPU slack).
            i_g = jax.nn.sigmoid(gates[:, 0:H])
            f_g = jax.nn.sigmoid(gates[:, H:2 * H])
            g_g = jnp.tanh(gates[:, 2 * H:3 * H])
            o_g = jax.nn.sigmoid(gates[:, 3 * H:4 * H])
            c_new = f_g * c + i_g * g_g
            h_new = o_g * jnp.tanh(c_new)
            h_ref[pl.ds(r0, sub), :] = h_new.astype(jnp.bfloat16)
            c_ref[pl.ds(r0, sub), :] = c_new
        return carry

    lax.fori_loop(0, T, step, 0, unroll=True)

    # TODO(synk): dropout is identity in inference mode (no RNG mask applied).

    # fc1 with eval-mode BatchNorm folded into (w1_eff, b1_eff), then LeakyReLU.
    h_last = h_ref[...]                                   # (Bt, H) bf16
    z = jnp.dot(h_last, w1_ref[...],
                preferred_element_type=jnp.float32) + b1_ref[...]
    act = jnp.where(z > 0, z, LEAKY_SLOPE * z)            # (Bt, H2) f32

    # fc2 (output dim 1): contract fc2 row against activations so the result
    # lands lane-dense as (1, Bt) — batch on the lane axis, no masked stores.
    out_row = lax.dot_general(
        w2_ref[...], act, (((1,), (1,)), ((), ())),
        preferred_element_type=jnp.float32) + b2_ref[...]
    out_ref[...] = out_row.astype(out_ref.dtype)


def prepare_params(p):
    """Fold / cast raw (PyTorch-layout) params into kernel layout."""
    H, H2 = HIDDEN1, HIDDEN2

    wih_t = p["w_ih"].T.astype(jnp.float32)               # (I, 4H)
    whh_t = p["w_hh"].T.astype(jnp.float32)               # (H, 4H)
    b = (p["b_ih"] + p["b_hh"]).reshape(1, 4 * H)         # (1, 4H)

    # Fold eval-mode BatchNorm into fc1.
    scale = p["bn_gamma"] * lax.rsqrt(p["bn_rvar"] + BN_EPS)         # (H2,)
    w1_eff = p["w1"].T * scale[None, :]                              # (H, H2)
    b1_eff = ((p["b1"] - p["bn_rmean"]) * scale + p["bn_beta"]).reshape(1, H2)

    return {
        "wih_p": wih_t.astype(jnp.bfloat16),
        "whh_p": whh_t.astype(jnp.bfloat16),
        "b_p": b.astype(jnp.float32),
        "w1_eff": w1_eff.astype(jnp.bfloat16),
        "b1_eff": b1_eff.astype(jnp.float32),
        "w2_row": p["w2"].reshape(1, H2).astype(jnp.float32),
        "b2": p["b2"].reshape(1, 1).astype(jnp.float32),
    }


def enhanced_lstm_forward(x, kp, *, batch_tile=B_TILE):
    """x: (B, T, I) float32. kp: output of prepare_params. Returns (B, 1) f32."""
    B, T, I = x.shape
    H, H2 = HIDDEN1, HIDDEN2

    # Pick the batch tile: small batches use one sublane-aligned tile; batches
    # spanning multiple tiles use a 128-multiple so output blocks stay
    # lane-aligned (and MXU rows are filled).
    if B > batch_tile:
        bt = _round_up(batch_tile, 128)
    else:
        bt = _round_up(max(B, 1), 8)
    NT = pl.cdiv(B, bt)
    Bp = NT * bt

    if Bp != B:
        x = jnp.concatenate([x, jnp.zeros((Bp - B, T, I), x.dtype)], axis=0)

    # Tile-major, then time-major within a tile: block j holds rows
    # [t * bt + b_local] for that batch tile.
    x2d = (x.reshape(NT, bt, T, I)
             .transpose(0, 2, 1, 3)
             .reshape(NT * T * bt, I)
             .astype(jnp.bfloat16))

    grid_spec = pltpu.PrefetchScalarGridSpec(
        num_scalar_prefetch=0,
        grid=(NT,),
        in_specs=[
            pl.BlockSpec((T * bt, I), lambda j: (j, 0)),     # x (per batch tile)
            pl.BlockSpec((I, 4 * H), lambda j: (0, 0)),      # W_ih (resident)
            pl.BlockSpec((H, 4 * H), lambda j: (0, 0)),      # W_hh (resident)
            pl.BlockSpec((1, 4 * H), lambda j: (0, 0)),      # fused lstm bias
            pl.BlockSpec((H, H2), lambda j: (0, 0)),         # fc1 (BN folded)
            pl.BlockSpec((1, H2), lambda j: (0, 0)),         # b1 (BN folded)
            pl.BlockSpec((1, H2), lambda j: (0, 0)),         # fc2 row
            pl.BlockSpec((1, 1), lambda j: (0, 0)),          # b2
        ],
        out_specs=pl.BlockSpec((1, bt), lambda j: (0, j)),   # lane-dense output
        scratch_shapes=[
            pltpu.VMEM((T * bt, 4 * H), jnp.float32),        # xg (hoisted gates)
            pltpu.VMEM((bt, H), jnp.bfloat16),               # h state
            pltpu.VMEM((bt, H), jnp.float32),                # c state
        ],
    )

    # Explicit VMEM budget: real footprint + headroom, >= 32 MiB but capped at
    # 64 MiB so the request is valid on v7x's smaller per-core VMEM.
    vmem_need = (
        T * bt * 4 * H * 4            # xg scratch (f32)
        + 2 * T * bt * I * 2          # x block, double-buffered (bf16)
        + bt * H * (2 + 4)            # h (bf16) + c (f32) state
        + (I + H) * 4 * H * 2         # W_ih + W_hh (bf16)
        + H * H2 * 2                  # fc1 (bf16)
        + 4 * (4 * H + 2 * H2 + 2)    # biases / fc2 row (f32)
        + 2 * bt * 4 * 2              # output row, double-buffered
    )
    vmem_limit = int(min(max(2 * vmem_need, 32 * 1024 * 1024), 64 * 1024 * 1024))

    out = pl.pallas_call(
        _lstm_mlp_kernel,
        out_shape=jax.ShapeDtypeStruct((1, Bp), jnp.float32),
        grid_spec=grid_spec,
        compiler_params=pltpu.CompilerParams(
            dimension_semantics=("parallel",),
            vmem_limit_bytes=vmem_limit),
    )(x2d, kp["wih_p"], kp["whh_p"], kp["b_p"],
      kp["w1_eff"], kp["b1_eff"], kp["w2_row"], kp["b2"])

    return out[0, :B].reshape(B, OUTPUT_SIZE)


def init_params(key):
    """Raw PyTorch-layout parameters."""
    ks = jax.random.split(key, 12)
    H, I, H2, O = HIDDEN1, INPUT_SIZE, HIDDEN2, OUTPUT_SIZE
    s = 0.1
    return {
        "w_ih": jax.random.uniform(ks[0], (4 * H, I), jnp.float32, -s, s),
        "w_hh": jax.random.uniform(ks[1], (4 * H, H), jnp.float32, -s, s),
        "b_ih": jax.random.uniform(ks[2], (4 * H,), jnp.float32, -s, s),
        "b_hh": jax.random.uniform(ks[3], (4 * H,), jnp.float32, -s, s),
        "w1": jax.random.uniform(ks[4], (H2, H), jnp.float32, -s, s),
        "b1": jax.random.uniform(ks[5], (H2,), jnp.float32, -s, s),
        "w2": jax.random.uniform(ks[6], (O, H2), jnp.float32, -s, s),
        "b2": jax.random.uniform(ks[7], (O,), jnp.float32, -s, s),
        # non-trivial running stats so the BN fold is actually exercised
        "bn_gamma": jax.random.uniform(ks[8], (H2,), jnp.float32, 0.5, 1.5),
        "bn_beta": jax.random.uniform(ks[9], (H2,), jnp.float32, -0.1, 0.1),
        "bn_rmean": jax.random.uniform(ks[10], (H2,), jnp.float32, -0.1, 0.1),
        "bn_rvar": jax.random.uniform(ks[11], (H2,), jnp.float32, 0.5, 1.5),
    }


def reference_forward(x, p):
    """Pure-JAX f32 reference with the original (unfused) math."""
    B, T, _ = x.shape
    H = HIDDEN1
    wih_t, whh_t = p["w_ih"].T, p["w_hh"].T
    b = p["b_ih"] + p["b_hh"]
    h = jnp.zeros((B, H), jnp.float32)
    c = jnp.zeros((B, H), jnp.float32)
    for t in range(T):
        gates = x[:, t, :] @ wih_t + h @ whh_t + b
        i_g = jax.nn.sigmoid(gates[:, 0:H])
        f_g = jax.nn.sigmoid(gates[:, H:2 * H])
        g_g = jnp.tanh(gates[:, 2 * H:3 * H])
        o_g = jax.nn.sigmoid(gates[:, 3 * H:4 * H])
        c = f_g * c + i_g * g_g
        h = o_g * jnp.tanh(c)
    fc1 = h @ p["w1"].T + p["b1"]
    bn = (fc1 - p["bn_rmean"]) * lax.rsqrt(p["bn_rvar"] + BN_EPS) * p["bn_gamma"] + p["bn_beta"]
    act = jnp.where(bn > 0, bn, LEAKY_SLOPE * bn)
    return act @ p["w2"].T + p["b2"]


if __name__ == "__main__":
    key = jax.random.PRNGKey(0)
    k_x, k_p, k_x2 = jax.random.split(key, 3)

    raw = init_params(k_p)
    kparams = prepare_params(raw)

    # Small test case (B=4, T=8): single 8-row tile.
    B, T = 4, 8
    x = jax.random.normal(k_x, (B, T, INPUT_SIZE), jnp.float32)
    out = jax.block_until_ready(enhanced_lstm_forward(x, kparams))
    ref = jax.block_until_ready(reference_forward(x, raw))
    assert out.shape == (B, OUTPUT_SIZE)
    assert jnp.allclose(out, ref, atol=2e-2, rtol=2e-2), (out, ref)

    # Larger batch exercises the 128-row tiles, multi-tile grid, sub-tile
    # interleaving and lane-dense output path.
    B2 = 200
    x2 = jax.random.normal(k_x2, (B2, T, INPUT_SIZE), jnp.float32)
    out2 = jax.block_until_ready(enhanced_lstm_forward(x2, kparams))
    ref2 = jax.block_until_ready(reference_forward(x2, raw))
    assert out2.shape == (B2, OUTPUT_SIZE)
    assert jnp.allclose(out2, ref2, atol=2e-2, rtol=2e-2), (out2, ref2)

    print("KERNEL_OK")
</pallas_src>

<mosaic_0001>
module attributes {stable_mosaic.version = 11 : i64} {
  func.func @_lstm_mlp_kernel(%arg0: i32, %arg1: memref<64x16xbf16, #tpu.memory_space<vmem>>, %arg2: memref<16x256xbf16, #tpu.memory_space<vmem>>, %arg3: memref<64x256xbf16, #tpu.memory_space<vmem>>, %arg4: memref<1x256xf32, #tpu.memory_space<vmem>>, %arg5: memref<64x32xbf16, #tpu.memory_space<vmem>>, %arg6: memref<1x32xf32, #tpu.memory_space<vmem>>, %arg7: memref<1x32xf32, #tpu.memory_space<vmem>>, %arg8: memref<1x1xf32, #tpu.memory_space<vmem>>, %arg9: memref<1x8xf32, #tpu.memory_space<vmem>>, %arg10: memref<64x256xf32, #tpu.memory_space<vmem>>, %arg11: memref<8x64xbf16, #tpu.memory_space<vmem>>, %arg12: memref<8x64xf32, #tpu.memory_space<vmem>>) attributes {dimension_semantics = [#tpu.dimension_semantics<parallel>], iteration_bounds = array<i64: 1>, scalar_prefetch = 0 : i64, scratch_operands = 3 : i64, tpu.core_type = #tpu.core_type<tc>, window_params = [{transform_indices = @transform_0, window_bounds = array<i64: 64, 16>}, {pipeline_mode = #tpu.pipeline_mode<synchronous>, transform_indices = @transform_1, window_bounds = array<i64: 16, 256>}, {pipeline_mode = #tpu.pipeline_mode<synchronous>, transform_indices = @transform_2, window_bounds = array<i64: 64, 256>}, {pipeline_mode = #tpu.pipeline_mode<synchronous>, transform_indices = @transform_3, window_bounds = array<i64: 1, 256>}, {pipeline_mode = #tpu.pipeline_mode<synchronous>, transform_indices = @transform_4, window_bounds = array<i64: 64, 32>}, {pipeline_mode = #tpu.pipeline_mode<synchronous>, transform_indices = @transform_5, window_bounds = array<i64: 1, 32>}, {pipeline_mode = #tpu.pipeline_mode<synchronous>, transform_indices = @transform_6, window_bounds = array<i64: 1, 32>}, {pipeline_mode = #tpu.pipeline_mode<synchronous>, transform_indices = @transform_7, window_bounds = array<i64: 1, 1>}, {transform_indices = @transform_8, window_bounds = array<i64: 1, 8>}]} {
    %c0 = arith.constant 0 : index
    %c0_0 = arith.constant 0 : index
    %0 = vector.load %arg1[%c0, %c0_0] : memref<64x16xbf16, #tpu.memory_space<vmem>>, vector<64x16xbf16>
    %c0_1 = arith.constant 0 : index
    %c0_2 = arith.constant 0 : index
    %1 = vector.load %arg2[%c0_1, %c0_2] : memref<16x256xbf16, #tpu.memory_space<vmem>>, vector<16x256xbf16>
    %cst = arith.constant dense<0.000000e+00> : vector<64x256xf32>
    %2 = tpu.matmul %0, %1, %cst {dimension_numbers = #tpu.dot_dimension_numbers<[1], [0], [0], [1], [0, 0, 1, 1], [], []>} : vector<64x16xbf16>, vector<16x256xbf16>, vector<64x256xf32> -> vector<64x256xf32>
    %c0_3 = arith.constant 0 : index
    %c0_4 = arith.constant 0 : index
    %3 = vector.load %arg4[%c0_3, %c0_4] : memref<1x256xf32, #tpu.memory_space<vmem>>, vector<1x256xf32>
    %4 = vector.broadcast %3 : vector<1x256xf32> to vector<64x256xf32>
    %5 = arith.addf %2, %4 : vector<64x256xf32>
    %c0_5 = arith.constant 0 : index
    %c0_6 = arith.constant 0 : index
    %6 = vector.load %arg10[%c0_5, %c0_6] : memref<64x256xf32, #tpu.memory_space<vmem>>, vector<64x256xf32>
    tpu.vector_store %arg10[%c0_5, %c0_6], %5 {strides = array<i32>} : memref<64x256xf32, #tpu.memory_space<vmem>>, vector<64x256xf32>,
    %cst_7 = arith.constant 0.000000e+00 : bf16
    %7 = vector.broadcast %cst_7 : bf16 to vector<8x64xbf16>
    %c0_8 = arith.constant 0 : index
    %c0_9 = arith.constant 0 : index
    %8 = vector.load %arg11[%c0_8, %c0_9] : memref<8x64xbf16, #tpu.memory_space<vmem>>, vector<8x64xbf16>
    tpu.vector_store %arg11[%c0_8, %c0_9], %7 {strides = array<i32>} : memref<8x64xbf16, #tpu.memory_space<vmem>>, vector<8x64xbf16>,
    %cst_10 = arith.constant 0.000000e+00 : f32
    %9 = vector.broadcast %cst_10 : f32 to vector<8x64xf32>
    %c0_11 = arith.constant 0 : index
    %c0_12 = arith.constant 0 : index
    %10 = vector.load %arg12[%c0_11, %c0_12] : memref<8x64xf32, #tpu.memory_space<vmem>>, vector<8x64xf32>
    tpu.vector_store %arg12[%c0_11, %c0_12], %9 {strides = array<i32>} : memref<8x64xf32, #tpu.memory_space<vmem>>, vector<8x64xf32>,
    %c0_i32 = arith.constant 0 : i32
    %c8_i32 = arith.constant 8 : i32
    %11 = arith.muli %c0_i32, %c8_i32 : i32
    %12 = tpu.assume_multiple %11, 8 : i32
    %c0_13 = arith.constant 0 : index
    %c0_14 = arith.constant 0 : index
    %13 = vector.load %arg11[%c0_13, %c0_14] : memref<8x64xbf16, #tpu.memory_space<vmem>>, vector<8x64xbf16>
    %c0_15 = arith.constant 0 : index
    %c0_16 = arith.constant 0 : index
    %14 = vector.load %arg12[%c0_15, %c0_16] : memref<8x64xf32, #tpu.memory_space<vmem>>, vector<8x64xf32>
    %c0_i32_17 = arith.constant 0 : i32
    %15 = arith.addi %12, %c0_i32_17 : i32
    %16 = arith.index_cast %15 : i32 to index
    %c0_18 = arith.constant 0 : index
    %17 = vector.load %arg10[%16, %c0_18] : memref<64x256xf32, #tpu.memory_space<vmem>>, vector<8x256xf32>
    %c0_19 = arith.constant 0 : index
    %c0_20 = arith.constant 0 : index
    %18 = vector.load %arg3[%c0_19, %c0_20] : memref<64x256xbf16, #tpu.memory_space<vmem>>, vector<64x256xbf16>
    %cst_21 = arith.constant dense<0.000000e+00> : vector<8x256xf32>
    %19 = tpu.matmul %13, %18, %cst_21 {dimension_numbers = #tpu.dot_dimension_numbers<[1], [0], [0], [1], [0, 0, 1, 1], [], []>} : vector<8x64xbf16>, vector<64x256xbf16>, vector<8x256xf32> -> vector<8x256xf32>
    %20 = arith.addf %17, %19 : vector<8x256xf32>
    %21 = vector.extract_strided_slice %20 {offsets = [0, 0], sizes = [8, 64], strides = [1, 1]} : vector<8x256xf32> to vector<8x64xf32>
    %22 = arith.negf %21 : vector<8x64xf32>
    %23 = math.exp %22 : vector<8x64xf32>
    %cst_22 = arith.constant 1.000000e+00 : f32
    %24 = vector.broadcast %cst_22 : f32 to vector<8x64xf32>
    %25 = arith.addf %24, %23 : vector<8x64xf32>
    %26 = arith.divf %24, %25 : vector<8x64xf32>
    %27 = vector.extract_strided_slice %20 {offsets = [0, 64], sizes = [8, 64], strides = [1, 1]} : vector<8x256xf32> to vector<8x64xf32>
    %28 = arith.negf %27 : vector<8x64xf32>
    %29 = math.exp %28 : vector<8x64xf32>
    %cst_23 = arith.constant 1.000000e+00 : f32
    %30 = vector.broadcast %cst_23 : f32 to vector<8x64xf32>
    %31 = arith.addf %30, %29 : vector<8x64xf32>
    %32 = arith.divf %30, %31 : vector<8x64xf32>
    %33 = vector.extract_strided_slice %20 {offsets = [0, 128], sizes = [8, 64], strides = [1, 1]} : vector<8x256xf32> to vector<8x64xf32>
    %34 = math.tanh %33 : vector<8x64xf32>
    %35 = vector.extract_strided_slice %20 {offsets = [0, 192], sizes = [8, 64], strides = [1, 1]} : vector<8x256xf32> to vector<8x64xf32>
    %36 = arith.negf %35 : vector<8x64xf32>
    %37 = math.exp %36 : vector<8x64xf32>
    %cst_24 = arith.constant 1.000000e+00 : f32
    %38 = vector.broadcast %cst_24 : f32 to vector<8x64xf32>
    %39 = arith.addf %38, %37 : vector<8x64xf32>
    %40 = arith.divf %38, %39 : vector<8x64xf32>
    %41 = arith.mulf %32, %14 : vector<8x64xf32>
    %42 = arith.mulf %26, %34 : vector<8x64xf32>
    %43 = arith.addf %41, %42 : vector<8x64xf32>
    %44 = math.tanh %43 : vector<8x64xf32>
    %45 = arith.mulf %40, %44 : vector<8x64xf32>
    %46 = arith.truncf %45 : vector<8x64xf32> to vector<8x64xbf16>
    %c0_25 = arith.constant 0 : index
    %c0_26 = arith.constant 0 : index
    %47 = vector.load %arg11[%c0_25, %c0_26] : memref<8x64xbf16, #tpu.memory_space<vmem>>, vector<8x64xbf16>
    tpu.vector_store %arg11[%c0_25, %c0_26], %46 {strides = array<i32>} : memref<8x64xbf16, #tpu.memory_space<vmem>>, vector<8x64xbf16>,
    %c0_27 = arith.constant 0 : index
    %c0_28 = arith.constant 0 : index
    %48 = vector.load %arg12[%c0_27, %c0_28] : memref<8x64xf32, #tpu.memory_space<vmem>>, vector<8x64xf32>
    tpu.vector_store %arg12[%c0_27, %c0_28], %43 {strides = array<i32>} : memref<8x64xf32, #tpu.memory_space<vmem>>, vector<8x64xf32>,
    %c1_i32 = arith.constant 1 : i32
    %c8_i32_29 = arith.constant 8 : i32
    %49 = arith.muli %c1_i32, %c8_i32_29 : i32
    %50 = tpu.assume_multiple %49, 8 : i32
    %c0_30 = arith.constant 0 : index
    %c0_31 = arith.constant 0 : index
    %51 = vector.load %arg11[%c0_30, %c0_31] : memref<8x64xbf16, #tpu.memory_space<vmem>>, vector<8x64xbf16>
    %c0_32 = arith.constant 0 : index
    %c0_33 = arith.constant 0 : index
    %52 = vector.load %arg12[%c0_32, %c0_33] : memref<8x64xf32, #tpu.memory_space<vmem>>, vector<8x64xf32>
    %c0_i32_34 = arith.constant 0 : i32
    %53 = arith.addi %50, %c0_i32_34 : i32
    %54 = arith.index_cast %53 : i32 to index
    %c0_35 = arith.constant 0 : index
    %55 = vector.load %arg10[%54, %c0_35] : memref<64x256xf32, #tpu.memory_space<vmem>>, vector<8x256xf32>
    %c0_36 = arith.constant 0 : index
    %c0_37 = arith.constant 0 : index
    %56 = vector.load %arg3[%c0_36, %c0_37] : memref<64x256xbf16, #tpu.memory_space<vmem>>, vector<64x256xbf16>
    %cst_38 = arith.constant dense<0.000000e+00> : vector<8x256xf32>
    %57 = tpu.matmul %51, %56, %cst_38 {dimension_numbers = #tpu.dot_dimension_numbers<[1], [0], [0], [1], [0, 0, 1, 1], [], []>} : vector<8x64xbf16>, vector<64x256xbf16>, vector<8x256xf32> -> vector<8x256xf32>
    %58 = arith.addf %55, %57 : vector<8x256xf32>
    %59 = vector.extract_strided_slice %58 {offsets = [0, 0], sizes = [8, 64], strides = [1, 1]} : vector<8x256xf32> to vector<8x64xf32>
    %60 = arith.negf %59 : vector<8x64xf32>
    %61 = math.exp %60 : vector<8x64xf32>
    %cst_39 = arith.constant 1.000000e+00 : f32
    %62 = vector.broadcast %cst_39 : f32 to vector<8x64xf32>
    %63 = arith.addf %62, %61 : vector<8x64xf32>
    %64 = arith.divf %62, %63 : vector<8x64xf32>
    %65 = vector.extract_strided_slice %58 {offsets = [0, 64], sizes = [8, 64], strides = [1, 1]} : vector<8x256xf32> to vector<8x64xf32>
    %66 = arith.negf %65 : vector<8x64xf32>
    %67 = math.exp %66 : vector<8x64xf32>
    %cst_40 = arith.constant 1.000000e+00 : f32
    %68 = vector.broadcast %cst_40 : f32 to vector<8x64xf32>
    %69 = arith.addf %68, %67 : vector<8x64xf32>
    %70 = arith.divf %68, %69 : vector<8x64xf32>
    %71 = vector.extract_strided_slice %58 {offsets = [0, 128], sizes = [8, 64], strides = [1, 1]} : vector<8x256xf32> to vector<8x64xf32>
    %72 = math.tanh %71 : vector<8x64xf32>
    %73 = vector.extract_strided_slice %58 {offsets = [0, 192], sizes = [8, 64], strides = [1, 1]} : vector<8x256xf32> to vector<8x64xf32>
    %74 = arith.negf %73 : vector<8x64xf32>
    %75 = math.exp %74 : vector<8x64xf32>
    %cst_41 = arith.constant 1.000000e+00 : f32
    %76 = vector.broadcast %cst_41 : f32 to vector<8x64xf32>
    %77 = arith.addf %76, %75 : vector<8x64xf32>
    %78 = arith.divf %76, %77 : vector<8x64xf32>
    %79 = arith.mulf %70, %52 : vector<8x64xf32>
    %80 = arith.mulf %64, %72 : vector<8x64xf32>
    %81 = arith.addf %79, %80 : vector<8x64xf32>
    %82 = math.tanh %81 : vector<8x64xf32>
    %83 = arith.mulf %78, %82 : vector<8x64xf32>
    %84 = arith.truncf %83 : vector<8x64xf32> to vector<8x64xbf16>
    %c0_42 = arith.constant 0 : index
    %c0_43 = arith.constant 0 : index
    %85 = vector.load %arg11[%c0_42, %c0_43] : memref<8x64xbf16, #tpu.memory_space<vmem>>, vector<8x64xbf16>
    tpu.vector_store %arg11[%c0_42, %c0_43], %84 {strides = array<i32>} : memref<8x64xbf16, #tpu.memory_space<vmem>>, vector<8x64xbf16>,
    %c0_44 = arith.constant 0 : index
    %c0_45 = arith.constant 0 : index
    %86 = vector.load %arg12[%c0_44, %c0_45] : memref<8x64xf32, #tpu.memory_space<vmem>>, vector<8x64xf32>
    tpu.vector_store %arg12[%c0_44, %c0_45], %81 {strides = array<i32>} : memref<8x64xf32, #tpu.memory_space<vmem>>, vector<8x64xf32>,
    %c2_i32 = arith.constant 2 : i32
    %c8_i32_46 = arith.constant 8 : i32
    %87 = arith.muli %c2_i32, %c8_i32_46 : i32
    %88 = tpu.assume_multiple %87, 8 : i32
    %c0_47 = arith.constant 0 : index
    %c0_48 = arith.constant 0 : index
    %89 = vector.load %arg11[%c0_47, %c0_48] : memref<8x64xbf16, #tpu.memory_space<vmem>>, vector<8x64xbf16>
    %c0_49 = arith.constant 0 : index
    %c0_50 = arith.constant 0 : index
    %90 = vector.load %arg12[%c0_49, %c0_50] : memref<8x64xf32, #tpu.memory_space<vmem>>, vector<8x64xf32>
    %c0_i32_51 = arith.constant 0 : i32
    %91 = arith.addi %88, %c0_i32_51 : i32
    %92 = arith.index_cast %91 : i32 to index
    %c0_52 = arith.constant 0 : index
    %93 = vector.load %arg10[%92, %c0_52] : memref<64x256xf32, #tpu.memory_space<vmem>>, vector<8x256xf32>
    %c0_53 = arith.constant 0 : index
    %c0_54 = arith.constant 0 : index
    %94 = vector.load %arg3[%c0_53, %c0_54] : memref<64x256xbf16, #tpu.memory_space<vmem>>, vector<64x256xbf16>
    %cst_55 = arith.constant dense<0.000000e+00> : vector<8x256xf32>
    %95 = tpu.matmul %89, %94, %cst_55 {dimension_numbers = #tpu.dot_dimension_numbers<[1], [0], [0], [1], [0, 0, 1, 1], [], []>} : vector<8x64xbf16>, vector<64x256xbf16>, vector<8x256xf32> -> vector<8x256xf32>
    %96 = arith.addf %93, %95 : vector<8x256xf32>
    %97 = vector.extract_strided_slice %96 {offsets = [0, 0], sizes = [8, 64], strides = [1, 1]} : vector<8x256xf32> to vector<8x64xf32>
    %98 = arith.negf %97 : vector<8x64xf32>
    %99 = math.exp %98 : vector<8x64xf32>
    %cst_56 = arith.constant 1.000000e+00 : f32
    %100 = vector.broadcast %cst_56 : f32 to vector<8x64xf32>
    %101 = arith.addf %100, %99 : vector<8x64xf32>
    %102 = arith.divf %100, %101 : vector<8x64xf32>
    %103 = vector.extract_strided_slice %96 {offsets = [0, 64], sizes = [8, 64], strides = [1, 1]} : vector<8x256xf32> to vector<8x64xf32>
    %104 = arith.negf %103 : vector<8x64xf32>
    %105 = math.exp %104 : vector<8x64xf32>
    %cst_57 = arith.constant 1.000000e+00 : f32
    %106 = vector.broadcast %cst_57 : f32 to vector<8x64xf32>
    %107 = arith.addf %106, %105 : vector<8x64xf32>
    %108 = arith.divf %106, %107 : vector<8x64xf32>
    %109 = vector.extract_strided_slice %96 {offsets = [0, 128], sizes = [8, 64], strides = [1, 1]} : vector<8x256xf32> to vector<8x64xf32>
    %110 = math.tanh %109 : vector<8x64xf32>
    %111 = vector.extract_strided_slice %96 {offsets = [0, 192], sizes = [8, 64], strides = [1, 1]} : vector<8x256xf32> to vector<8x64xf32>
    %112 = arith.negf %111 : vector<8x64xf32>
    %113 = math.exp %112 : vector<8x64xf32>
    %cst_58 = arith.constant 1.000000e+00 : f32
    %114 = vector.broadcast %cst_58 : f32 to vector<8x64xf32>
    %115 = arith.addf %114, %113 : vector<8x64xf32>
    %116 = arith.divf %114, %115 : vector<8x64xf32>
    %117 = arith.mulf %108, %90 : vector<8x64xf32>
    %118 = arith.mulf %102, %110 : vector<8x64xf32>
    %119 = arith.addf %117, %118 : vector<8x64xf32>
    %120 = math.tanh %119 : vector<8x64xf32>
    %121 = arith.mulf %116, %120 : vector<8x64xf32>
    %122 = arith.truncf %121 : vector<8x64xf32> to vector<8x64xbf16>
    %c0_59 = arith.constant 0 : index
    %c0_60 = arith.constant 0 : index
    %123 = vector.load %arg11[%c0_59, %c0_60] : memref<8x64xbf16, #tpu.memory_space<vmem>>, vector<8x64xbf16>
    tpu.vector_store %arg11[%c0_59, %c0_60], %122 {strides = array<i32>} : memref<8x64xbf16, #tpu.memory_space<vmem>>, vector<8x64xbf16>,
    %c0_61 = arith.constant 0 : index
    %c0_62 = arith.constant 0 : index
    %124 = vector.load %arg12[%c0_61, %c0_62] : memref<8x64xf32, #tpu.memory_space<vmem>>, vector<8x64xf32>
    tpu.vector_store %arg12[%c0_61, %c0_62], %119 {strides = array<i32>} : memref<8x64xf32, #tpu.memory_space<vmem>>, vector<8x64xf32>,
    %c3_i32 = arith.constant 3 : i32
    %c8_i32_63 = arith.constant 8 : i32
    %125 = arith.muli %c3_i32, %c8_i32_63 : i32
    %126 = tpu.assume_multiple %125, 8 : i32
    %c0_64 = arith.constant 0 : index
    %c0_65 = arith.constant 0 : index
    %127 = vector.load %arg11[%c0_64, %c0_65] : memref<8x64xbf16, #tpu.memory_space<vmem>>, vector<8x64xbf16>
    %c0_66 = arith.constant 0 : index
    %c0_67 = arith.constant 0 : index
    %128 = vector.load %arg12[%c0_66, %c0_67] : memref<8x64xf32, #tpu.memory_space<vmem>>, vector<8x64xf32>
    %c0_i32_68 = arith.constant 0 : i32
    %129 = arith.addi %126, %c0_i32_68 : i32
    %130 = arith.index_cast %129 : i32 to index
    %c0_69 = arith.constant 0 : index
    %131 = vector.load %arg10[%130, %c0_69] : memref<64x256xf32, #tpu.memory_space<vmem>>, vector<8x256xf32>
    %c0_70 = arith.constant 0 : index
    %c0_71 = arith.constant 0 : index
    %132 = vector.load %arg3[%c0_70, %c0_71] : memref<64x256xbf16, #tpu.memory_space<vmem>>, vector<64x256xbf16>
    %cst_72 = arith.constant dense<0.000000e+00> : vector<8x256xf32>
    %133 = tpu.matmul %127, %132, %cst_72 {dimension_numbers = #tpu.dot_dimension_numbers<[1], [0], [0], [1], [0, 0, 1, 1], [], []>} : vector<8x64xbf16>, vector<64x256xbf16>, vector<8x256xf32> -> vector<8x256xf32>
    %134 = arith.addf %131, %133 : vector<8x256xf32>
    %135 = vector.extract_strided_slice %134 {offsets = [0, 0], sizes = [8, 64], strides = [1, 1]} : vector<8x256xf32> to vector<8x64xf32>
    %136 = arith.negf %135 : vector<8x64xf32>
    %137 = math.exp %136 : vector<8x64xf32>
    %cst_73 = arith.constant 1.000000e+00 : f32
    %138 = vector.broadcast %cst_73 : f32 to vector<8x64xf32>
    %139 = arith.addf %138, %137 : vector<8x64xf32>
    %140 = arith.divf %138, %139 : vector<8x64xf32>
    %141 = vector.extract_strided_slice %134 {offsets = [0, 64], sizes = [8, 64], strides = [1, 1]} : vector<8x256xf32> to vector<8x64xf32>
    %142 = arith.negf %141 : vector<8x64xf32>
    %143 = math.exp %142 : vector<8x64xf32>
    %cst_74 = arith.constant 1.000000e+00 : f32
    %144 = vector.broadcast %cst_74 : f32 to vector<8x64xf32>
    %145 = arith.addf %144, %143 : vector<8x64xf32>
    %146 = arith.divf %144, %145 : vector<8x64xf32>
    %147 = vector.extract_strided_slice %134 {offsets = [0, 128], sizes = [8, 64], strides = [1, 1]} : vector<8x256xf32> to vector<8x64xf32>
    %148 = math.tanh %147 : vector<8x64xf32>
    %149 = vector.extract_strided_slice %134 {offsets = [0, 192], sizes = [8, 64], strides = [1, 1]} : vector<8x256xf32> to vector<8x64xf32>
    %150 = arith.negf %149 : vector<8x64xf32>
    %151 = math.exp %150 : vector<8x64xf32>
    %cst_75 = arith.constant 1.000000e+00 : f32
    %152 = vector.broadcast %cst_75 : f32 to vector<8x64xf32>
    %153 = arith.addf %152, %151 : vector<8x64xf32>
    %154 = arith.divf %152, %153 : vector<8x64xf32>
    %155 = arith.mulf %146, %128 : vector<8x64xf32>
    %156 = arith.mulf %140, %148 : vector<8x64xf32>
    %157 = arith.addf %155, %156 : vector<8x64xf32>
    %158 = math.tanh %157 : vector<8x64xf32>
    %159 = arith.mulf %154, %158 : vector<8x64xf32>
    %160 = arith.truncf %159 : vector<8x64xf32> to vector<8x64xbf16>
    %c0_76 = arith.constant 0 : index
    %c0_77 = arith.constant 0 : index
    %161 = vector.load %arg11[%c0_76, %c0_77] : memref<8x64xbf16, #tpu.memory_space<vmem>>, vector<8x64xbf16>
    tpu.vector_store %arg11[%c0_76, %c0_77], %160 {strides = array<i32>} : memref<8x64xbf16, #tpu.memory_space<vmem>>, vector<8x64xbf16>,
    %c0_78 = arith.constant 0 : index
    %c0_79 = arith.constant 0 : index
    %162 = vector.load %arg12[%c0_78, %c0_79] : memref<8x64xf32, #tpu.memory_space<vmem>>, vector<8x64xf32>
    tpu.vector_store %arg12[%c0_78, %c0_79], %157 {strides = array<i32>} : memref<8x64xf32, #tpu.memory_space<vmem>>, vector<8x64xf32>,
    %c4_i32 = arith.constant 4 : i32
    %c8_i32_80 = arith.constant 8 : i32
    %163 = arith.muli %c4_i32, %c8_i32_80 : i32
    %164 = tpu.assume_multiple %163, 8 : i32
    %c0_81 = arith.constant 0 : index
    %c0_82 = arith.constant 0 : index
    %165 = vector.load %arg11[%c0_81, %c0_82] : memref<8x64xbf16, #tpu.memory_space<vmem>>, vector<8x64xbf16>
    %c0_83 = arith.constant 0 : index
    %c0_84 = arith.constant 0 : index
    %166 = vector.load %arg12[%c0_83, %c0_84] : memref<8x64xf32, #tpu.memory_space<vmem>>, vector<8x64xf32>
    %c0_i32_85 = arith.constant 0 : i32
    %167 = arith.addi %164, %c0_i32_85 : i32
    %168 = arith.index_cast %167 : i32 to index
    %c0_86 = arith.constant 0 : index
    %169 = vector.load %arg10[%168, %c0_86] : memref<64x256xf32, #tpu.memory_space<vmem>>, vector<8x256xf32>
    %c0_87 = arith.constant 0 : index
    %c0_88 = arith.constant 0 : index
    %170 = vector.load %arg3[%c0_87, %c0_88] : memref<64x256xbf16, #tpu.memory_space<vmem>>, vector<64x256xbf16>
    %cst_89 = arith.constant dense<0.000000e+00> : vector<8x256xf32>
    %171 = tpu.matmul %165, %170, %cst_89 {dimension_numbers = #tpu.dot_dimension_numbers<[1], [0], [0], [1], [0, 0, 1, 1], [], []>} : vector<8x64xbf16>, vector<64x256xbf16>, vector<8x256xf32> -> vector<8x256xf32>
    %172 = arith.addf %169, %171 : vector<8x256xf32>
    %173 = vector.extract_strided_slice %172 {offsets = [0, 0], sizes = [8, 64], strides = [1, 1]} : vector<8x256xf32> to vector<8x64xf32>
    %174 = arith.negf %173 : vector<8x64xf32>
    %175 = math.exp %174 : vector<8x64xf32>
    %cst_90 = arith.constant 1.000000e+00 : f32
    %176 = vector.broadcast %cst_90 : f32 to vector<8x64xf32>
    %177 = arith.addf %176, %175 : vector<8x64xf32>
    %178 = arith.divf %176, %177 : vector<8x64xf32>
    %179 = vector.extract_strided_slice %172 {offsets = [0, 64], sizes = [8, 64], strides = [1, 1]} : vector<8x256xf32> to vector<8x64xf32>
    %180 = arith.negf %179 : vector<8x64xf32>
    %181 = math.exp %180 : vector<8x64xf32>
    %cst_91 = arith.constant 1.000000e+00 : f32
    %182 = vector.broadcast %cst_91 : f32 to vector<8x64xf32>
    %183 = arith.addf %182, %181 : vector<8x64xf32>
    %184 = arith.divf %182, %183 : vector<8x64xf32>
    %185 = vector.extract_strided_slice %172 {offsets = [0, 128], sizes = [8, 64], strides = [1, 1]} : vector<8x256xf32> to vector<8x64xf32>
    %186 = math.tanh %185 : vector<8x64xf32>
    %187 = vector.extract_strided_slice %172 {offsets = [0, 192], sizes = [8, 64], strides = [1, 1]} : vector<8x256xf32> to vector<8x64xf32>
    %188 = arith.negf %187 : vector<8x64xf32>
    %189 = math.exp %188 : vector<8x64xf32>
    %cst_92 = arith.constant 1.000000e+00 : f32
    %190 = vector.broadcast %cst_92 : f32 to vector<8x64xf32>
    %191 = arith.addf %190, %189 : vector<8x64xf32>
    %192 = arith.divf %190, %191 : vector<8x64xf32>
    %193 = arith.mulf %184, %166 : vector<8x64xf32>
    %194 = arith.mulf %178, %186 : vector<8x64xf32>
    %195 = arith.addf %193, %194 : vector<8x64xf32>
    %196 = math.tanh %195 : vector<8x64xf32>
    %197 = arith.mulf %192, %196 : vector<8x64xf32>
    %198 = arith.truncf %197 : vector<8x64xf32> to vector<8x64xbf16>
    %c0_93 = arith.constant 0 : index
    %c0_94 = arith.constant 0 : index
    %199 = vector.load %arg11[%c0_93, %c0_94] : memref<8x64xbf16, #tpu.memory_space<vmem>>, vector<8x64xbf16>
    tpu.vector_store %arg11[%c0_93, %c0_94], %198 {strides = array<i32>} : memref<8x64xbf16, #tpu.memory_space<vmem>>, vector<8x64xbf16>,
    %c0_95 = arith.constant 0 : index
    %c0_96 = arith.constant 0 : index
    %200 = vector.load %arg12[%c0_95, %c0_96] : memref<8x64xf32, #tpu.memory_space<vmem>>, vector<8x64xf32>
    tpu.vector_store %arg12[%c0_95, %c0_96], %195 {strides = array<i32>} : memref<8x64xf32, #tpu.memory_space<vmem>>, vector<8x64xf32>,
    %c5_i32 = arith.constant 5 : i32
    %c8_i32_97 = arith.constant 8 : i32
    %201 = arith.muli %c5_i32, %c8_i32_97 : i32
    %202 = tpu.assume_multiple %201, 8 : i32
    %c0_98 = arith.constant 0 : index
    %c0_99 = arith.constant 0 : index
    %203 = vector.load %arg11[%c0_98, %c0_99] : memref<8x64xbf16, #tpu.memory_space<vmem>>, vector<8x64xbf16>
    %c0_100 = arith.constant 0 : index
    %c0_101 = arith.constant 0 : index
    %204 = vector.load %arg12[%c0_100, %c0_101] : memref<8x64xf32, #tpu.memory_space<vmem>>, vector<8x64xf32>
    %c0_i32_102 = arith.constant 0 : i32
    %205 = arith.addi %202, %c0_i32_102 : i32
    %206 = arith.index_cast %205 : i32 to index
    %c0_103 = arith.constant 0 : index
    %207 = vector.load %arg10[%206, %c0_103] : memref<64x256xf32, #tpu.memory_space<vmem>>, vector<8x256xf32>
    %c0_104 = arith.constant 0 : index
    %c0_105 = arith.constant 0 : index
    %208 = vector.load %arg3[%c0_104, %c0_105] : memref<64x256xbf16, #tpu.memory_space<vmem>>, vector<64x256xbf16>
    %cst_106 = arith.constant dense<0.000000e+00> : vector<8x256xf32>
    %209 = tpu.matmul %203, %208, %cst_106 {dimension_numbers = #tpu.dot_dimension_numbers<[1], [0], [0], [1], [0, 0, 1, 1], [], []>} : vector<8x64xbf16>, vector<64x256xbf16>, vector<8x256xf32> -> vector<8x256xf32>
    %210 = arith.addf %207, %209 : vector<8x256xf32>
    %211 = vector.extract_strided_slice %210 {offsets = [0, 0], sizes = [8, 64], strides = [1, 1]} : vector<8x256xf32> to vector<8x64xf32>
    %212 = arith.negf %211 : vector<8x64xf32>
    %213 = math.exp %212 : vector<8x64xf32>
    %cst_107 = arith.constant 1.000000e+00 : f32
    %214 = vector.broadcast %cst_107 : f32 to vector<8x64xf32>
    %215 = arith.addf %214, %213 : vector<8x64xf32>
    %216 = arith.divf %214, %215 : vector<8x64xf32>
    %217 = vector.extract_strided_slice %210 {offsets = [0, 64], sizes = [8, 64], strides = [1, 1]} : vector<8x256xf32> to vector<8x64xf32>
    %218 = arith.negf %217 : vector<8x64xf32>
    %219 = math.exp %218 : vector<8x64xf32>
    %cst_108 = arith.constant 1.000000e+00 : f32
    %220 = vector.broadcast %cst_108 : f32 to vector<8x64xf32>
    %221 = arith.addf %220, %219 : vector<8x64xf32>
    %222 = arith.divf %220, %221 : vector<8x64xf32>
    %223 = vector.extract_strided_slice %210 {offsets = [0, 128], sizes = [8, 64], strides = [1, 1]} : vector<8x256xf32> to vector<8x64xf32>
    %224 = math.tanh %223 : vector<8x64xf32>
    %225 = vector.extract_strided_slice %210 {offsets = [0, 192], sizes = [8, 64], strides = [1, 1]} : vector<8x256xf32> to vector<8x64xf32>
    %226 = arith.negf %225 : vector<8x64xf32>
    %227 = math.exp %226 : vector<8x64xf32>
    %cst_109 = arith.constant 1.000000e+00 : f32
    %228 = vector.broadcast %cst_109 : f32 to vector<8x64xf32>
    %229 = arith.addf %228, %227 : vector<8x64xf32>
    %230 = arith.divf %228, %229 : vector<8x64xf32>
    %231 = arith.mulf %222, %204 : vector<8x64xf32>
    %232 = arith.mulf %216, %224 : vector<8x64xf32>
    %233 = arith.addf %231, %232 : vector<8x64xf32>
    %234 = math.tanh %233 : vector<8x64xf32>
    %235 = arith.mulf %230, %234 : vector<8x64xf32>
    %236 = arith.truncf %235 : vector<8x64xf32> to vector<8x64xbf16>
    %c0_110 = arith.constant 0 : index
    %c0_111 = arith.constant 0 : index
    %237 = vector.load %arg11[%c0_110, %c0_111] : memref<8x64xbf16, #tpu.memory_space<vmem>>, vector<8x64xbf16>
    tpu.vector_store %arg11[%c0_110, %c0_111], %236 {strides = array<i32>} : memref<8x64xbf16, #tpu.memory_space<vmem>>, vector<8x64xbf16>,
    %c0_112 = arith.constant 0 : index
    %c0_113 = arith.constant 0 : index
    %238 = vector.load %arg12[%c0_112, %c0_113] : memref<8x64xf32, #tpu.memory_space<vmem>>, vector<8x64xf32>
    tpu.vector_store %arg12[%c0_112, %c0_113], %233 {strides = array<i32>} : memref<8x64xf32, #tpu.memory_space<vmem>>, vector<8x64xf32>,
    %c6_i32 = arith.constant 6 : i32
    %c8_i32_114 = arith.constant 8 : i32
    %239 = arith.muli %c6_i32, %c8_i32_114 : i32
    %240 = tpu.assume_multiple %239, 8 : i32
    %c0_115 = arith.constant 0 : index
    %c0_116 = arith.constant 0 : index
    %241 = vector.load %arg11[%c0_115, %c0_116] : memref<8x64xbf16, #tpu.memory_space<vmem>>, vector<8x64xbf16>
    %c0_117 = arith.constant 0 : index
    %c0_118 = arith.constant 0 : index
    %242 = vector.load %arg12[%c0_117, %c0_118] : memref<8x64xf32, #tpu.memory_space<vmem>>, vector<8x64xf32>
    %c0_i32_119 = arith.constant 0 : i32
    %243 = arith.addi %240, %c0_i32_119 : i32
    %244 = arith.index_cast %243 : i32 to index
    %c0_120 = arith.constant 0 : index
    %245 = vector.load %arg10[%244, %c0_120] : memref<64x256xf32, #tpu.memory_space<vmem>>, vector<8x256xf32>
    %c0_121 = arith.constant 0 : index
    %c0_122 = arith.constant 0 : index
    %246 = vector.load %arg3[%c0_121, %c0_122] : memref<64x256xbf16, #tpu.memory_space<vmem>>, vector<64x256xbf16>
    %cst_123 = arith.constant dense<0.000000e+00> : vector<8x256xf32>
    %247 = tpu.matmul %241, %246, %cst_123 {dimension_numbers = #tpu.dot_dimension_numbers<[1], [0], [0], [1], [0, 0, 1, 1], [], []>} : vector<8x64xbf16>, vector<64x256xbf16>, vector<8x256xf32> -> vector<8x256xf32>
    %248 = arith.addf %245, %247 : vector<8x256xf32>
    %249 = vector.extract_strided_slice %248 {offsets = [0, 0], sizes = [8, 64], strides = [1, 1]} : vector<8x256xf32> to vector<8x64xf32>
    %250 = arith.negf %249 : vector<8x64xf32>
    %251 = math.exp %250 : vector<8x64xf32>
    %cst_124 = arith.constant 1.000000e+00 : f32
    %252 = vector.broadcast %cst_124 : f32 to vector<8x64xf32>
    %253 = arith.addf %252, %251 : vector<8x64xf32>
    %254 = arith.divf %252, %253 : vector<8x64xf32>
    %255 = vector.extract_strided_slice %248 {offsets = [0, 64], sizes = [8, 64], strides = [1, 1]} : vector<8x256xf32> to vector<8x64xf32>
    %256 = arith.negf %255 : vector<8x64xf32>
    %257 = math.exp %256 : vector<8x64xf32>
    %cst_125 = arith.constant 1.000000e+00 : f32
    %258 = vector.broadcast %cst_125 : f32 to vector<8x64xf32>
    %259 = arith.addf %258, %257 : vector<8x64xf32>
    %260 = arith.divf %258, %259 : vector<8x64xf32>
    %261 = vector.extract_strided_slice %248 {offsets = [0, 128], sizes = [8, 64], strides = [1, 1]} : vector<8x256xf32> to vector<8x64xf32>
    %262 = math.tanh %261 : vector<8x64xf32>
    %263 = vector.extract_strided_slice %248 {offsets = [0, 192], sizes = [8, 64], strides = [1, 1]} : vector<8x256xf32> to vector<8x64xf32>
    %264 = arith.negf %263 : vector<8x64xf32>
    %265 = math.exp %264 : vector<8x64xf32>
    %cst_126 = arith.constant 1.000000e+00 : f32
    %266 = vector.broadcast %cst_126 : f32 to vector<8x64xf32>
    %267 = arith.addf %266, %265 : vector<8x64xf32>
    %268 = arith.divf %266, %267 : vector<8x64xf32>
    %269 = arith.mulf %260, %242 : vector<8x64xf32>
    %270 = arith.mulf %254, %262 : vector<8x64xf32>
    %271 = arith.addf %269, %270 : vector<8x64xf32>
    %272 = math.tanh %271 : vector<8x64xf32>
    %273 = arith.mulf %268, %272 : vector<8x64xf32>
    %274 = arith.truncf %273 : vector<8x64xf32> to vector<8x64xbf16>
    %c0_127 = arith.constant 0 : index
    %c0_128 = arith.constant 0 : index
    %275 = vector.load %arg11[%c0_127, %c0_128] : memref<8x64xbf16, #tpu.memory_space<vmem>>, vector<8x64xbf16>
    tpu.vector_store %arg11[%c0_127, %c0_128], %274 {strides = array<i32>} : memref<8x64xbf16, #tpu.memory_space<vmem>>, vector<8x64xbf16>,
    %c0_129 = arith.constant 0 : index
    %c0_130 = arith.constant 0 : index
    %276 = vector.load %arg12[%c0_129, %c0_130] : memref<8x64xf32, #tpu.memory_space<vmem>>, vector<8x64xf32>
    tpu.vector_store %arg12[%c0_129, %c0_130], %271 {strides = array<i32>} : memref<8x64xf32, #tpu.memory_space<vmem>>, vector<8x64xf32>,
    %c7_i32 = arith.constant 7 : i32
    %c8_i32_131 = arith.constant 8 : i32
    %277 = arith.muli %c7_i32, %c8_i32_131 : i32
    %278 = tpu.assume_multiple %277, 8 : i32
    %c0_132 = arith.constant 0 : index
    %c0_133 = arith.constant 0 : index
    %279 = vector.load %arg11[%c0_132, %c0_133] : memref<8x64xbf16, #tpu.memory_space<vmem>>, vector<8x64xbf16>
    %c0_134 = arith.constant 0 : index
    %c0_135 = arith.constant 0 : index
    %280 = vector.load %arg12[%c0_134, %c0_135] : memref<8x64xf32, #tpu.memory_space<vmem>>, vector<8x64xf32>
    %c0_i32_136 = arith.constant 0 : i32
    %281 = arith.addi %278, %c0_i32_136 : i32
    %282 = arith.index_cast %281 : i32 to index
    %c0_137 = arith.constant 0 : index
    %283 = vector.load %arg10[%282, %c0_137] : memref<64x256xf32, #tpu.memory_space<vmem>>, vector<8x256xf32>
    %c0_138 = arith.constant 0 : index
    %c0_139 = arith.constant 0 : index
    %284 = vector.load %arg3[%c0_138, %c0_139] : memref<64x256xbf16, #tpu.memory_space<vmem>>, vector<64x256xbf16>
    %cst_140 = arith.constant dense<0.000000e+00> : vector<8x256xf32>
    %285 = tpu.matmul %279, %284, %cst_140 {dimension_numbers = #tpu.dot_dimension_numbers<[1], [0], [0], [1], [0, 0, 1, 1], [], []>} : vector<8x64xbf16>, vector<64x256xbf16>, vector<8x256xf32> -> vector<8x256xf32>
    %286 = arith.addf %283, %285 : vector<8x256xf32>
    %287 = vector.extract_strided_slice %286 {offsets = [0, 0], sizes = [8, 64], strides = [1, 1]} : vector<8x256xf32> to vector<8x64xf32>
    %288 = arith.negf %287 : vector<8x64xf32>
    %289 = math.exp %288 : vector<8x64xf32>
    %cst_141 = arith.constant 1.000000e+00 : f32
    %290 = vector.broadcast %cst_141 : f32 to vector<8x64xf32>
    %291 = arith.addf %290, %289 : vector<8x64xf32>
    %292 = arith.divf %290, %291 : vector<8x64xf32>
    %293 = vector.extract_strided_slice %286 {offsets = [0, 64], sizes = [8, 64], strides = [1, 1]} : vector<8x256xf32> to vector<8x64xf32>
    %294 = arith.negf %293 : vector<8x64xf32>
    %295 = math.exp %294 : vector<8x64xf32>
    %cst_142 = arith.constant 1.000000e+00 : f32
    %296 = vector.broadcast %cst_142 : f32 to vector<8x64xf32>
    %297 = arith.addf %296, %295 : vector<8x64xf32>
    %298 = arith.divf %296, %297 : vector<8x64xf32>
    %299 = vector.extract_strided_slice %286 {offsets = [0, 128], sizes = [8, 64], strides = [1, 1]} : vector<8x256xf32> to vector<8x64xf32>
    %300 = math.tanh %299 : vector<8x64xf32>
    %301 = vector.extract_strided_slice %286 {offsets = [0, 192], sizes = [8, 64], strides = [1, 1]} : vector<8x256xf32> to vector<8x64xf32>
    %302 = arith.negf %301 : vector<8x64xf32>
    %303 = math.exp %302 : vector<8x64xf32>
    %cst_143 = arith.constant 1.000000e+00 : f32
    %304 = vector.broadcast %cst_143 : f32 to vector<8x64xf32>
    %305 = arith.addf %304, %303 : vector<8x64xf32>
    %306 = arith.divf %304, %305 : vector<8x64xf32>
    %307 = arith.mulf %298, %280 : vector<8x64xf32>
    %308 = arith.mulf %292, %300 : vector<8x64xf32>
    %309 = arith.addf %307, %308 : vector<8x64xf32>
    %310 = math.tanh %309 : vector<8x64xf32>
    %311 = arith.mulf %306, %310 : vector<8x64xf32>
    %312 = arith.truncf %311 : vector<8x64xf32> to vector<8x64xbf16>
    %c0_144 = arith.constant 0 : index
    %c0_145 = arith.constant 0 : index
    %313 = vector.load %arg11[%c0_144, %c0_145] : memref<8x64xbf16, #tpu.memory_space<vmem>>, vector<8x64xbf16>
    tpu.vector_store %arg11[%c0_144, %c0_145], %312 {strides = array<i32>} : memref<8x64xbf16, #tpu.memory_space<vmem>>, vector<8x64xbf16>,
    %c0_146 = arith.constant 0 : index
    %c0_147 = arith.constant 0 : index
    %314 = vector.load %arg12[%c0_146, %c0_147] : memref<8x64xf32, #tpu.memory_space<vmem>>, vector<8x64xf32>
    tpu.vector_store %arg12[%c0_146, %c0_147], %309 {strides = array<i32>} : memref<8x64xf32, #tpu.memory_space<vmem>>, vector<8x64xf32>,
    %c8_i32_148 = arith.constant 8 : i32
    %c0_149 = arith.constant 0 : index
    %c0_150 = arith.constant 0 : index
    %315 = vector.load %arg11[%c0_149, %c0_150] : memref<8x64xbf16, #tpu.memory_space<vmem>>, vector<8x64xbf16>
    %c0_151 = arith.constant 0 : index
    %c0_152 = arith.constant 0 : index
    %316 = vector.load %arg5[%c0_151, %c0_152] : memref<64x32xbf16, #tpu.memory_space<vmem>>, vector<64x32xbf16>
    %cst_153 = arith.constant dense<0.000000e+00> : vector<8x32xf32>
    %317 = tpu.matmul %315, %316, %cst_153 {dimension_numbers = #tpu.dot_dimension_numbers<[1], [0], [0], [1], [0, 0, 1, 1], [], []>} : vector<8x64xbf16>, vector<64x32xbf16>, vector<8x32xf32> -> vector<8x32xf32>
    %c0_154 = arith.constant 0 : index
    %c0_155 = arith.constant 0 : index
    %318 = vector.load %arg6[%c0_154, %c0_155] : memref<1x32xf32, #tpu.memory_space<vmem>>, vector<1x32xf32>
    %319 = vector.broadcast %318 : vector<1x32xf32> to vector<8x32xf32>
    %320 = arith.addf %317, %319 : vector<8x32xf32>
    %cst_156 = arith.constant 0.000000e+00 : f32
    %321 = vector.broadcast %cst_156 : f32 to vector<8x32xf32>
    %322 = arith.cmpf ogt, %320, %321 : vector<8x32xf32>
    %cst_157 = arith.constant 1.000000e-01 : f32
    %323 = vector.broadcast %cst_157 : f32 to vector<8x32xf32>
    %324 = arith.mulf %323, %320 : vector<8x32xf32>
    %325 = arith.select %322, %320, %324 : vector<8x32xi1>, vector<8x32xf32>
    %c0_158 = arith.constant 0 : index
    %c0_159 = arith.constant 0 : index
    %326 = vector.load %arg7[%c0_158, %c0_159] : memref<1x32xf32, #tpu.memory_space<vmem>>, vector<1x32xf32>
    %cst_160 = arith.constant dense<0.000000e+00> : vector<1x8xf32>
    %327 = tpu.matmul %326, %325, %cst_160 {dimension_numbers = #tpu.dot_dimension_numbers<[1], [1], [0], [0], [0, 0, 1, 0], [], []>} : vector<1x32xf32>, vector<8x32xf32>, vector<1x8xf32> -> vector<1x8xf32>
    %c0_161 = arith.constant 0 : index
    %c0_162 = arith.constant 0 : index
    %328 = vector.load %arg8[%c0_161, %c0_162] : memref<1x1xf32, #tpu.memory_space<vmem>>, vector<1x1xf32>
    %329 = vector.broadcast %328 : vector<1x1xf32> to vector<1x8xf32>
    %330 = arith.addf %327, %329 : vector<1x8xf32>
    %c0_163 = arith.constant 0 : index
    %c0_164 = arith.constant 0 : index
    %331 = vector.load %arg9[%c0_163, %c0_164] : memref<1x8xf32, #tpu.memory_space<vmem>>, vector<1x8xf32>
    tpu.vector_store %arg9[%c0_163, %c0_164], %330 {strides = array<i32>} : memref<1x8xf32, #tpu.memory_space<vmem>>, vector<1x8xf32>,
    return
  }
  func.func @transform_0(%arg0: i32) -> (i32, i32) {
    %c0_i32 = arith.constant 0 : i32
    %c0_i32_0 = arith.constant 0 : i32
    return %arg0, %c0_i32 : i32, i32
  }
  func.func @transform_1(%arg0: i32) -> (i32, i32) {
    %c0_i32 = arith.constant 0 : i32
    %c0_i32_0 = arith.constant 0 : i32
    %c0_i32_1 = arith.constant 0 : i32
    return %c0_i32, %c0_i32_0 : i32, i32
  }
  func.func @transform_2(%arg0: i32) -> (i32, i32) {
    %c0_i32 = arith.constant 0 : i32
    %c0_i32_0 = arith.constant 0 : i32
    %c0_i32_1 = arith.constant 0 : i32
    return %c0_i32, %c0_i32_0 : i32, i32
  }
  func.func @transform_3(%arg0: i32) -> (i32, i32) {
    %c0_i32 = arith.constant 0 : i32
    %c0_i32_0 = arith.constant 0 : i32
    %c0_i32_1 = arith.constant 0 : i32
    return %c0_i32, %c0_i32_0 : i32, i32
  }
  func.func @transform_4(%arg0: i32) -> (i32, i32) {
    %c0_i32 = arith.constant 0 : i32
    %c0_i32_0 = arith.constant 0 : i32
    %c0_i32_1 = arith.constant 0 : i32
    return %c0_i32, %c0_i32_0 : i32, i32
  }
  func.func @transform_5(%arg0: i32) -> (i32, i32) {
    %c0_i32 = arith.constant 0 : i32
    %c0_i32_0 = arith.constant 0 : i32
    %c0_i32_1 = arith.constant 0 : i32
    return %c0_i32, %c0_i32_0 : i32, i32
  }
  func.func @transform_6(%arg0: i32) -> (i32, i32) {
    %c0_i32 = arith.constant 0 : i32
    %c0_i32_0 = arith.constant 0 : i32
    %c0_i32_1 = arith.constant 0 : i32
    return %c0_i32, %c0_i32_0 : i32, i32
  }
  func.func @transform_7(%arg0: i32) -> (i32, i32) {
    %c0_i32 = arith.constant 0 : i32
    %c0_i32_0 = arith.constant 0 : i32
    %c0_i32_1 = arith.constant 0 : i32
    return %c0_i32, %c0_i32_0 : i32, i32
  }
  func.func @transform_8(%arg0: i32) -> (i32, i32) {
    %c0_i32 = arith.constant 0 : i32
    %c0_i32_0 = arith.constant 0 : i32
    return %c0_i32, %arg0 : i32, i32
  }
}

</mosaic_0001>

<bundles_post_ra>
// kernel: tpu_custom_call.1
= control target key start
LH: loop header
LB: loop body
LE: loop exit
PB: predicated region body
PF: predicated region fallthrough
CT: control target
= control target key end

     0   :  { %s2179_s0 = inlined_call_operand.vmem [shape: bf16[64,16], index: 0, kind: input, shape index: {}]   ;;  %s2180_s1 = inlined_call_operand.vmem [shape: bf16[16,256], index: 1, kind: input, shape index: {}]   ;;  %s2181_s2 = inlined_call_operand.vmem [shape: bf16[64,256], index: 2, kind: input, shape index: {}]   ;;  %s2182_s3 = inlined_call_operand.hbm [shape: f32[1,256], index: 3, kind: input, shape index: {}]   ;;  %s2183_s4 = inlined_call_operand.vmem [shape: bf16[64,32], index: 4, kind: input, shape index: {}]   ;;  %s2184_s5 = inlined_call_operand.vmem [shape: f32[1,32], index: 5, kind: input, shape index: {}]   ;;  %s2185_s6 = inlined_call_operand.vmem [shape: f32[1,32], index: 6, kind: input, shape index: {}]   ;;  %s2186_s7 = inlined_call_operand.<no memory space> [shape: f32[1,1], index: 7, kind: input, shape index: {}]   ;;  %s2187_s8 = inlined_call_operand.hbm [shape: f32[1,8], index: 8, kind: output, shape index: {}]  }
   0x1   :  { %v13_v0 = vstv %s2186_s7 }
   0x2   :  { %14 = vst [vmem:[#allocation5] sm:$0x1] %v13_v0 }
   0x3   :  { %15 = vsyncpa [#allocation7], 0 }
   0x4   :  { %16 = vsyncpa [#allocation8], 0  ;;  %s1838_s29 = smov [#allocation6]  }
   0x5   :  { %s29_s30 = sshll.u32 %s1838_s29, 4  ;;  %s30_s30 = int_to_ptr.vmem [resolvable:$true] %s29_s30 }
   0x6   :  { %s1802_s9 = scalar_lea.vmem %s30_s30, 32  ;;  %p1807_p1 = scmp.lt.s32.totalorder %s30_s30, %s30_s30 }
   0x7   :  { %p1803_p0 = scmp.ne.s32.totalorder %s30_s30, %s1802_s9  ;;  %p1808_p2 = scmp.lt.s32.totalorder %s1802_s9, %s1802_s9 }
   0x9   :  { %p1809_p3 = por %p1808_p2, %p1807_p1 }
   0xb   :  { %p1810_p4 = pnand %p1809_p3, %p1803_p0 }
   0xd   :  { %1813 = shalt.err (!%p1810_p4)
}
   0xe   :  { %32 = dma.hbm_to_vmem [thread:$0]  %s2182_s3, 32, %s30_s30, [#allocation7]  }
   0xf   :  { %1834 = dma.done.wait [#allocation7], 32  }
  0x10   :  { %1835 = vsyncadd [#allocation7], 4294967264  ;;  %vm199_vm0 = vcmask 519168   ;;  %v1839_v1 = vmov 0   ;;  %vm201_vm1 = vcmask 523264   ;;  %v1840_v2 = vmov 0.0  }
  0x11   :  { %142 = vmatprep.mubr.bf16.mxu0 %v1839_v1  ;;  %293 = vmatprep.mubr.bf16.mxu1 %v1839_v1  ;;  %200 = vst.msk [vmem:[#allocation3] sm:$0xf] %vm199_vm0, %v1839_v1  ;;  %v1906_v3 = vld [vmem:[%s2181_s2 + $0x34] ss:$8 sps:$4 sm:$0xff]   ;;  %v1911_v4 = vld [vmem:[%s2181_s2 + $0x30] ss:$8 sps:$4 sm:$0xff]   ;;  %v57_v16 = vlaneseq }
  0x12   :  { %202 = vst.msk [vmem:[#allocation4] sm:$0xff] %vm201_vm1, %v1840_v2  ;;  %1673 = vset.pattern.permute.xlu1 %v1839_v1  ;;  %1674 = vset.pattern.permute.xlu0 %v1839_v1  ;;  %v1678_v5 = vld [vmem:[%s2180_s1 + $0x4] ss:$8 sps:$4 sm:$0xff]   ;;  %v1682_v7 = vld [vmem:[%s2180_s1] ss:$8 sps:$4 sm:$0xff]   ;;  %vm97_vm2 = vcmask 130048  }
  0x13   :  { %269 = vmatprep.subr.bf16.mxu1 %v1906_v3  ;;  %v1921_v6 = vld [vmem:[%s2181_s2 + $0x24] ss:$8 sps:$4 sm:$0xff]   ;;  %v1929_v8 = vld [vmem:[%s2181_s2 + $0x20] ss:$8 sps:$4 sm:$0xff]   ;;  %124 = vmatprep.subr.bf16.mxu0 %v1678_v5  ;;  %v1938_v10 = vld [vmem:[%s2181_s2 + $0x14] ss:$8 sps:$4 sm:$0xff]  }
  0x14   :  { %270 = vmatpush1.bf16.msra.mxu1 %v1911_v4  ;;  %v1684_v9 = vld [vmem:[%s2179_s0] sm:$0xff]   ;;  %125 = vmatpush1.bf16.msra.mxu0 %v1682_v7  ;;  %v1945_v11 = vld [vmem:[%s2181_s2 + $0x10] ss:$8 sps:$4 sm:$0xff]   ;;  %s1841_s9 = smov 64   ;;  %v1983_v17 = vshrl.u32 %v57_v16, 7  ;;  %v1691_v16 = vld [vmem:[%s2179_s0 + $0x8] sm:$0xff]  }
  0x15   :  { %271 = vmatprep.subr.bf16.mxu1 %v1921_v6  ;;  %549 = vmatprep.subr.bf16.mxu0 %v1906_v3  ;;  %v1952_v12 = vld [vmem:[%s2181_s2 + $0x4] ss:$8 sps:$4 sm:$0xff]   ;;  %v1957_v14 = vld [vmem:[%s2181_s2] ss:$8 sps:$4 sm:$0xff]   ;;  %vm1842_vm3 = vmmov 0   ;;  %vm1420_vm5 = vcmask 261120  }
  0x16   :  { %v59_v18 = vsub.s32 0, %v1983_v17  ;;  %v55_v19 = vld [vmem:[#allocation6] sm:$0x3]  ;;  %v63_v28 = vsub.s32 1, %v1983_v17  ;;  %vm1497_vm6 = vcmask 57344  }
  0x17   :  { %1527 = vmatmul.mubr.msk.bf16.vlgmr.msra.gmra.mxu0 %vm97_vm2, %v1684_v9 }
  0x18   :  { %272 = vmatpush1.bf16.msra.mxu1 %v1929_v8  ;;  %152 = vmatprep.mubr.bf16.mxu0 %v1839_v1  ;;  %v203_v15 = vld [vmem:[#allocation3] sm:$0xf]  ;;  %v1988_v20 = vrot.slane %v55_v19, %v59_v18  ;;  %v1992_v30 = vrot.slane %v55_v19, %v63_v28 }
  0x19   :  { %273 = vmatprep.subr.bf16.mxu1 %v1938_v10  ;;  %v204_v13 = vld [vmem:[#allocation4] sm:$0xff]  ;;  %550 = vmatpush1.bf16.msra.mxu0 %v1911_v4 }
  0x1a   :  { %318 = vrot.lane.b32.xlu0 %v204_v13, %s1841_s9  ;;  %551 = vmatprep.subr.bf16.mxu0 %v1921_v6 }
  0x1c   :  { %274 = vmatpush1.bf16.msra.mxu1 %v1945_v11 }
  0x1d   :  { %275 = vmatprep.subr.bf16.mxu1 %v1952_v12  ;;  %552 = vmatpush1.bf16.msra.mxu0 %v1929_v8 }
  0x1e   :  { %553 = vmatprep.subr.bf16.mxu0 %v1938_v10 }
  0x1f   :  { %1528 = vmatmul.mubr.msk.bf16.gmra.mxu0 %vm97_vm2, %v1691_v16 }
  0x20   :  { %276 = vmatpush1.bf16.msra.mxu1 %v1957_v14  ;;  %162 = vmatprep.mubr.bf16.mxu0 %v1839_v1 }
  0x21   :  { %409 = vmatprep.subr.bf16.mxu1 %v1906_v3  ;;  %554 = vmatpush1.bf16.msra.mxu0 %v1945_v11 }
  0x22   :  { %555 = vmatprep.subr.bf16.mxu0 %v1952_v12 }
  0x23   :  { %1539 = vmatmul.mubr.msk.bf16.vlgmr.msra.gmra.mxu1 %vm201_vm1, %v203_v15 }
  0x24   :  { %410 = vmatpush1.bf16.msra.mxu1 %v1911_v4  ;;  %433 = vmatprep.mubr.bf16.mxu1 %v1839_v1 }
  0x25   :  { %411 = vmatprep.subr.bf16.mxu1 %v1921_v6  ;;  %556 = vmatpush1.bf16.msra.mxu0 %v1957_v14 }
  0x26   :  { %829 = vmatprep.subr.bf16.mxu0 %v1906_v3 }
  0x28   :  { %412 = vmatpush1.bf16.msra.mxu1 %v1929_v8 }
  0x29   :  { %413 = vmatprep.subr.bf16.mxu1 %v1938_v10 }
  0x2c   :  { %414 = vmatpush1.bf16.msra.mxu1 %v1945_v11 }
  0x2d   :  { %415 = vmatprep.subr.bf16.mxu1 %v1952_v12 }
  0x30   :  { %416 = vmatpush1.bf16.msra.mxu1 %v1957_v14 }
  0x31   :  { %689 = vmatprep.subr.bf16.mxu1 %v1906_v3 }
  0x8c   :  { %v319_v41 = vpop.permute.xlu0 %318 }
  0xd7   :  { %v144_v21 = vpop.f32.mrf.mxu0 }
  0xd8   :  { %v145_v22 = vadd.f32 %v144_v21, %v1988_v20  ;;  %v1692_v21 = vld [vmem:[%s2179_s0 + $0x10] sm:$0xff]  }
  0xd9   :  { %v146_v31 = vpop.f32.mrf.mxu0  ;;  %1529 = vmatmul.mubr.msk.bf16.gmra.mxu0 %vm97_vm2, %v1692_v21 }
  0xda   :  { %v147_v32 = vadd.f32 %v146_v31, %v1992_v30  ;;  %172 = vmatprep.mubr.bf16.mxu0 %v1839_v1 }
  0xdb   :  { %v148_v54 = vpop.f32.mrf.mxu0 }
  0xdc   :  { %v149_v55 = vadd.f32 %v148_v54, %v1988_v20 }
  0xdd   :  { %v150_v62 = vpop.f32.mrf.mxu0 }
  0xde   :  { %v151_v63 = vadd.f32 %v150_v62, %v1992_v30 }
  0xe3   :  { %v295_v23 = vpop.f32.mrf.mxu1 }
  0xe4   :  { %v302_v24 = vadd.f32 %v295_v23, %v145_v22 }
  0xe5   :  { %v297_v25 = vpop.f32.mrf.mxu1 }
  0xe6   :  { %v1540_v26 = vmul.f32 -1.442695, %v302_v24  ;;  %v303_v33 = vadd.f32 %v297_v25, %v147_v32  ;;  %v1693_v25 = vld [vmem:[%s2179_s0 + $0x18] sm:$0xff]  }
  0xe7   :  { %v299_v27 = vpop.f32.mrf.mxu1  ;;  %1530 = vmatmul.mubr.msk.bf16.gmra.mxu0 %vm97_vm2, %v1693_v25 }
  0xe8   :  { %1698 = vpow2.f32 %v1540_v26  ;;  %v1541_v39 = vmul.f32 -1.442695, %v303_v33  ;;  %573 = vmatprep.mubr.bf16.mxu0 %v1839_v1 }
  0xe9   :  { %v300_v29 = vpop.f32.mrf.mxu1  ;;  %1700 = vtanh.f32 %v303_v33 }
  0xf5   :  { %v1699_v34 = vpop.eup %1698 }
  0xf6   :  { %v307_v35 = vadd.f32 1.0, %v1699_v34  ;;  %v1701_v36 = vpop.eup %1700 }
  0xf8   :  { %1702 = vrcp.f32 %v307_v35 }
  0xf9   :  { %1704 = vpow2.f32 %v1541_v39 }
 0x105   :  { %v1703_v37 = vpop.eup %1702 }
 0x106   :  { %v322_v38 = vmul.f32 %v1703_v37, %v1701_v36  ;;  %v1705_v40 = vpop.eup %1704  ;;  %v321_v43 = vmul.f32 %v1703_v37, %v319_v41 }
 0x107   :  { %v314_v42 = vadd.f32 1.0, %v1705_v40 }
 0x108   :  { %324 = vrot.lane.b32.xlu0 %v322_v38, %s1841_s9  ;;  %v154_v38 = vpop.f32.mrf.mxu0 }
 0x109   :  { %1706 = vrcp.f32 %v314_v42 }
 0x10a   :  { %v156_v39 = vpop.f32.mrf.mxu0 }
 0x10c   :  { %v158_v40 = vpop.f32.mrf.mxu0 }
 0x10e   :  { %v2044_v41 = vpop.f32.mrf.mxu0 }
 0x116   :  { %v1707_v46 = vpop.eup %1706 }
 0x17a   :  { %v325_v44 = vpop.permute.xlu0 %324 }
 0x17b   :  { %v327_v45 = vadd.f32 %v325_v44, %v321_v43 }
 0x17d   :  { %1708 = vtanh.f32 %v327_v45 }
 0x18a   :  { %v1709_v47 = vpop.eup %1708 }
 0x18b   :  { %v329_v48 = vmul.f32 %v1709_v47, %v1707_v46 }
 0x18d   :  { %v1635_v49 = vpack.c.bf16 %v329_v48, %v329_v48 }
 0x18f   :  { %334 = vrot.lane.b32.xlu1 %v1635_v49, %s1841_s9 }
 0x193   :  { %339 = vrot.lane.b32.xlu1 %v327_v45, %s1841_s9 }
 0x199   :  { %v2046_v42 = vpop.f32.mrf.mxu0 }
 0x19b   :  { %v2048_v43 = vpop.f32.mrf.mxu0 }
 0x19d   :  { %v2050_v44 = vpop.f32.mrf.mxu0 }
 0x19f   :  { %v2052_v45 = vpop.f32.mrf.mxu0 }
 0x1a7   :  { %v2054_v46 = vpop.f32.mrf.mxu0 }
 0x1a9   :  { %v2056_v47 = vpop.f32.mrf.mxu0 }
 0x1ab   :  { %v2058_v48 = vpop.f32.mrf.mxu0 }
 0x1ad   :  { %v2060_v49 = vpop.f32.mrf.mxu0 }
 0x201   :  { %v335_v50 = vpop.permute.xlu1 %334 }
 0x202   :  { %337 = vst.msk [vmem:[#allocation3] sm:$0xf] %vm199_vm0, %v335_v50  ;;  %v155_v50 = vadd.f32 %v154_v38, %v1988_v20 }
 0x205   :  { %v340_v51 = vpop.permute.xlu1 %339 }
 0x206   :  { %342 = vst.msk [vmem:[#allocation4] sm:$0xff] %vm201_vm1, %v340_v51 }
 0x209   :  { %v343_v52 = vld [vmem:[#allocation3] sm:$0xf] }
 0x20a   :  { %1551 = vmatmul.mubr.msk.bf16.vlgmr.msra.gmra.mxu1 %vm201_vm1, %v343_v52 }
 0x20b   :  { %690 = vmatpush1.bf16.msra.mxu1 %v1911_v4  ;;  %713 = vmatprep.mubr.bf16.mxu1 %v1839_v1 }
 0x20c   :  { %691 = vmatprep.subr.bf16.mxu1 %v1921_v6 }
 0x20d   :  { %v344_v53 = vld [vmem:[#allocation4] sm:$0xff] }
 0x20e   :  { %458 = vrot.lane.b32.xlu0 %v344_v53, %s1841_s9 }
 0x20f   :  { %692 = vmatpush1.bf16.msra.mxu1 %v1929_v8 }
 0x210   :  { %693 = vmatprep.subr.bf16.mxu1 %v1938_v10 }
 0x213   :  { %694 = vmatpush1.bf16.msra.mxu1 %v1945_v11 }
 0x214   :  { %695 = vmatprep.subr.bf16.mxu1 %v1952_v12 }
 0x217   :  { %696 = vmatpush1.bf16.msra.mxu1 %v1957_v14 }
 0x218   :  { %969 = vmatprep.subr.bf16.mxu1 %v1906_v3 }
 0x280   :  { %v459_v23 = vpop.permute.xlu0 %458 }
 0x2ca   :  { %v435_v56 = vpop.f32.mrf.mxu1 }
 0x2cb   :  { %v442_v57 = vadd.f32 %v435_v56, %v149_v55 }
 0x2cc   :  { %v437_v58 = vpop.f32.mrf.mxu1 }
 0x2cd   :  { %v1552_v59 = vmul.f32 -1.442695, %v442_v57  ;;  %v443_v0 = vadd.f32 %v437_v58, %v151_v63  ;;  %v157_v57 = vadd.f32 %v156_v39, %v1992_v30 }
 0x2ce   :  { %v439_v60 = vpop.f32.mrf.mxu1 }
 0x2cf   :  { %1710 = vpow2.f32 %v1552_v59  ;;  %v1553_v19 = vmul.f32 -1.442695, %v443_v0 }
 0x2d0   :  { %v440_v61 = vpop.f32.mrf.mxu1  ;;  %1712 = vtanh.f32 %v443_v0 }
 0x2dc   :  { %v1711_v5 = vpop.eup %1710 }
 0x2dd   :  { %v447_v7 = vadd.f32 1.0, %v1711_v5  ;;  %v1713_v9 = vpop.eup %1712 }
 0x2df   :  { %1714 = vrcp.f32 %v447_v7 }
 0x2e0   :  { %1716 = vpow2.f32 %v1553_v19 }
 0x2ec   :  { %v1715_v13 = vpop.eup %1714 }
 0x2ed   :  { %v462_v15 = vmul.f32 %v1715_v13, %v1713_v9  ;;  %v1717_v22 = vpop.eup %1716  ;;  %v461_v26 = vmul.f32 %v1715_v13, %v459_v23 }
 0x2ee   :  { %v454_v24 = vadd.f32 1.0, %v1717_v22 }
 0x2ef   :  { %464 = vrot.lane.b32.xlu1 %v462_v15, %s1841_s9 }
 0x2f0   :  { %1718 = vrcp.f32 %v454_v24 }
 0x2fd   :  { %v1719_v29 = vpop.eup %1718 }
 0x361   :  { %v465_v27 = vpop.permute.xlu1 %464 }
 0x362   :  { %v467_v28 = vadd.f32 %v465_v27, %v461_v26 }
 0x364   :  { %1720 = vtanh.f32 %v467_v28  ;;  %479 = vrot.lane.b32.xlu1 %v467_v28, %s1841_s9  ;;  %v159_v28 = vadd.f32 %v158_v40, %v1988_v20 }
 0x371   :  { %v1721_v31 = vpop.eup %1720 }
 0x372   :  { %v469_v32 = vmul.f32 %v1721_v31, %v1719_v29 }
 0x374   :  { %v1636_v33 = vpack.c.bf16 %v469_v32, %v469_v32 }
 0x376   :  { %474 = vrot.lane.b32.xlu0 %v1636_v33, %s1841_s9 }
 0x3d6   :  { %v480_v34 = vpop.permute.xlu1 %479 }
 0x3d7   :  { %482 = vst.msk [vmem:[#allocation4] sm:$0xff] %vm201_vm1, %v480_v34 }
 0x3de   :  { %v484_v35 = vld [vmem:[#allocation4] sm:$0xff] }
 0x3df   :  { %598 = vrot.lane.b32.xlu0 %v484_v35, %s1841_s9 }
 0x3e8   :  { %v475_v36 = vpop.permute.xlu0 %474 }
 0x3e9   :  { %477 = vst.msk [vmem:[#allocation3] sm:$0xf] %vm199_vm0, %v475_v36  ;;  %v161_v36 = vadd.f32 %v2044_v41, %v1992_v30 }
 0x3f0   :  { %v483_v37 = vld [vmem:[#allocation3] sm:$0xf] }
 0x3f1   :  { %1563 = vmatmul.mubr.msk.bf16.vlgmr.msra.gmra.mxu0 %vm201_vm1, %v483_v37 }
 0x3f2   :  { %830 = vmatpush1.bf16.msra.mxu0 %v1911_v4  ;;  %853 = vmatprep.mubr.bf16.mxu0 %v1839_v1 }
 0x3f3   :  { %831 = vmatprep.subr.bf16.mxu0 %v1921_v6 }
 0x3f6   :  { %832 = vmatpush1.bf16.msra.mxu0 %v1929_v8 }
 0x3f7   :  { %833 = vmatprep.subr.bf16.mxu0 %v1938_v10 }
 0x3fa   :  { %834 = vmatpush1.bf16.msra.mxu0 %v1945_v11 }
 0x3fb   :  { %835 = vmatprep.subr.bf16.mxu0 %v1952_v12 }
 0x3fe   :  { %836 = vmatpush1.bf16.msra.mxu0 %v1957_v14 }
 0x3ff   :  { %1109 = vmatprep.subr.bf16.mxu0 %v1906_v3 }
 0x451   :  { %v599_v7 = vpop.permute.xlu0 %598 }
 0x4b1   :  { %v575_v51 = vpop.f32.mrf.mxu0 }
 0x4b2   :  { %v582_v52 = vadd.f32 %v575_v51, %v155_v50 }
 0x4b3   :  { %v577_v53 = vpop.f32.mrf.mxu0 }
 0x4b4   :  { %v1564_v54 = vmul.f32 -1.442695, %v582_v52  ;;  %v583_v58 = vadd.f32 %v577_v53, %v157_v57 }
 0x4b5   :  { %v579_v55 = vpop.f32.mrf.mxu0 }
 0x4b6   :  { %1722 = vpow2.f32 %v1564_v54  ;;  %v1565_v0 = vmul.f32 -1.442695, %v583_v58 }
 0x4b7   :  { %v580_v56 = vpop.f32.mrf.mxu0  ;;  %1724 = vtanh.f32 %v583_v58 }
 0x4c3   :  { %v1723_v59 = vpop.eup %1722 }
 0x4c4   :  { %v587_v60 = vadd.f32 1.0, %v1723_v59  ;;  %v1725_v61 = vpop.eup %1724 }
 0x4c6   :  { %1726 = vrcp.f32 %v587_v60 }
 0x4c7   :  { %1728 = vpow2.f32 %v1565_v0 }
 0x4d3   :  { %v1727_v62 = vpop.eup %1726 }
 0x4d4   :  { %v602_v63 = vmul.f32 %v1727_v62, %v1725_v61  ;;  %v1729_v5 = vpop.eup %1728  ;;  %v601_v13 = vmul.f32 %v1727_v62, %v599_v7 }
 0x4d5   :  { %v594_v9 = vadd.f32 1.0, %v1729_v5  ;;  %v165_v5 = vadd.f32 %v2046_v42, %v1988_v20 }
 0x4d6   :  { %604 = vrot.lane.b32.xlu1 %v602_v63, %s1841_s9 }
 0x4d7   :  { %1730 = vrcp.f32 %v594_v9 }
 0x4e4   :  { %v1731_v19 = vpop.eup %1730 }
 0x548   :  { %v605_v15 = vpop.permute.xlu1 %604 }
 0x549   :  { %v607_v16 = vadd.f32 %v605_v15, %v601_v13 }
 0x54b   :  { %1732 = vtanh.f32 %v607_v16  ;;  %619 = vrot.lane.b32.xlu1 %v607_v16, %s1841_s9 }
 0x558   :  { %v1733_v21 = vpop.eup %1732 }
 0x559   :  { %v609_v22 = vmul.f32 %v1733_v21, %v1731_v19  ;;  %v167_v21 = vadd.f32 %v2048_v43, %v1992_v30 }
 0x55b   :  { %v1637_v23 = vpack.c.bf16 %v609_v22, %v609_v22 }
 0x55d   :  { %614 = vrot.lane.b32.xlu0 %v1637_v23, %s1841_s9 }
 0x5bd   :  { %v620_v24 = vpop.permute.xlu1 %619 }
 0x5be   :  { %622 = vst.msk [vmem:[#allocation4] sm:$0xff] %vm201_vm1, %v620_v24 }
 0x5c5   :  { %v624_v25 = vld [vmem:[#allocation4] sm:$0xff] }
 0x5c6   :  { %738 = vrot.lane.b32.xlu0 %v624_v25, %s1841_s9 }
 0x5cf   :  { %v615_v26 = vpop.permute.xlu0 %614 }
 0x5d0   :  { %617 = vst.msk [vmem:[#allocation3] sm:$0xf] %vm199_vm0, %v615_v26 }
 0x5d7   :  { %v623_v27 = vld [vmem:[#allocation3] sm:$0xf] }
 0x5d8   :  { %1575 = vmatmul.mubr.msk.bf16.vlgmr.msra.gmra.mxu1 %vm201_vm1, %v623_v27 }
 0x5d9   :  { %970 = vmatpush1.bf16.msra.mxu1 %v1911_v4  ;;  %993 = vmatprep.mubr.bf16.mxu1 %v1839_v1 }
 0x5da   :  { %971 = vmatprep.subr.bf16.mxu1 %v1921_v6 }
 0x5dd   :  { %972 = vmatpush1.bf16.msra.mxu1 %v1929_v8 }
 0x5de   :  { %973 = vmatprep.subr.bf16.mxu1 %v1938_v10 }
 0x5e1   :  { %974 = vmatpush1.bf16.msra.mxu1 %v1945_v11 }
 0x5e2   :  { %975 = vmatprep.subr.bf16.mxu1 %v1952_v12 }
 0x5e5   :  { %976 = vmatpush1.bf16.msra.mxu1 %v1957_v14 }
 0x5e6   :  { %1249 = vmatprep.subr.bf16.mxu1 %v1906_v3 }
 0x638   :  { %v739_v53 = vpop.permute.xlu0 %738 }
 0x698   :  { %v715_v29 = vpop.f32.mrf.mxu1 }
 0x699   :  { %v722_v31 = vadd.f32 %v715_v29, %v159_v28 }
 0x69a   :  { %v717_v32 = vpop.f32.mrf.mxu1 }
 0x69b   :  { %v1576_v33 = vmul.f32 -1.442695, %v722_v31  ;;  %v723_v37 = vadd.f32 %v717_v32, %v161_v36 }
 0x69c   :  { %v719_v34 = vpop.f32.mrf.mxu1 }
 0x69d   :  { %1734 = vpow2.f32 %v1576_v33  ;;  %v1577_v40 = vmul.f32 -1.442695, %v723_v37 }
 0x69e   :  { %v720_v35 = vpop.f32.mrf.mxu1  ;;  %1736 = vtanh.f32 %v723_v37 }
 0x6aa   :  { %v1735_v38 = vpop.eup %1734 }
 0x6ab   :  { %v727_v39 = vadd.f32 1.0, %v1735_v38  ;;  %v1737_v50 = vpop.eup %1736 }
 0x6ad   :  { %1738 = vrcp.f32 %v727_v39 }
 0x6ae   :  { %1740 = vpow2.f32 %v1577_v40 }
 0x6ba   :  { %v1739_v51 = vpop.eup %1738 }
 0x6bb   :  { %v742_v3 = vmul.f32 %v1739_v51, %v1737_v50  ;;  %v1741_v52 = vpop.eup %1740  ;;  %v741_v55 = vmul.f32 %v1739_v51, %v739_v53 }
 0x6bc   :  { %v734_v54 = vadd.f32 1.0, %v1741_v52 }
 0x6bd   :  { %744 = vrot.lane.b32.xlu1 %v742_v3, %s1841_s9  ;;  %v169_v3 = vadd.f32 %v2050_v44, %v1988_v20 }
 0x6be   :  { %1742 = vrcp.f32 %v734_v54 }
 0x6cb   :  { %v1743_v41 = vpop.eup %1742 }
 0x72f   :  { %v745_v56 = vpop.permute.xlu1 %744 }
 0x730   :  { %v747_v57 = vadd.f32 %v745_v56, %v741_v55 }
 0x732   :  { %1744 = vtanh.f32 %v747_v57  ;;  %759 = vrot.lane.b32.xlu1 %v747_v57, %s1841_s9 }
 0x73f   :  { %v1745_v58 = vpop.eup %1744 }
 0x740   :  { %v749_v59 = vmul.f32 %v1745_v58, %v1743_v41 }
 0x742   :  { %v1638_v60 = vpack.c.bf16 %v749_v59, %v749_v59 }
 0x744   :  { %754 = vrot.lane.b32.xlu0 %v1638_v60, %s1841_s9 }
 0x7a4   :  { %v760_v61 = vpop.permute.xlu1 %759 }
 0x7a5   :  { %762 = vst.msk [vmem:[#allocation4] sm:$0xff] %vm201_vm1, %v760_v61 }
 0x7ac   :  { %v764_v62 = vld [vmem:[#allocation4] sm:$0xff] }
 0x7ad   :  { %878 = vrot.lane.b32.xlu0 %v764_v62, %s1841_s9 }
 0x7b6   :  { %v755_v63 = vpop.permute.xlu0 %754 }
 0x7b7   :  { %757 = vst.msk [vmem:[#allocation3] sm:$0xf] %vm199_vm0, %v755_v63 }
 0x7be   :  { %v763_v0 = vld [vmem:[#allocation3] sm:$0xf] }
 0x7bf   :  { %1587 = vmatmul.mubr.msk.bf16.vlgmr.msra.gmra.mxu0 %vm201_vm1, %v763_v0 }
 0x7c0   :  { %1110 = vmatpush1.bf16.msra.mxu0 %v1911_v4  ;;  %1133 = vmatprep.mubr.bf16.mxu0 %v1839_v1 }
 0x7c1   :  { %1111 = vmatprep.subr.bf16.mxu0 %v1921_v6 }
 0x7c4   :  { %1112 = vmatpush1.bf16.msra.mxu0 %v1929_v8 }
 0x7c5   :  { %1113 = vmatprep.subr.bf16.mxu0 %v1938_v10 }
 0x7c8   :  { %1114 = vmatpush1.bf16.msra.mxu0 %v1945_v11 }
 0x7c9   :  { %1115 = vmatprep.subr.bf16.mxu0 %v1952_v12 }
 0x7cc   :  { %1116 = vmatpush1.bf16.msra.mxu0 %v1957_v14 }
 0x7cd   :  { %1650 = vmatprep.subr.bf16.mxu0 %v1840_v2 }
 0x81f   :  { %v879_v29 = vpop.permute.xlu0 %878 }
 0x87f   :  { %v855_v7 = vpop.f32.mrf.mxu0 }
 0x880   :  { %v862_v9 = vadd.f32 %v855_v7, %v165_v5 }
 0x881   :  { %v857_v13 = vpop.f32.mrf.mxu0 }
 0x882   :  { %v1588_v15 = vmul.f32 -1.442695, %v862_v9  ;;  %v863_v22 = vadd.f32 %v857_v13, %v167_v21  ;;  %v175_v13 = vadd.f32 %v2054_v46, %v1988_v20 }
 0x883   :  { %v859_v16 = vpop.f32.mrf.mxu0 }
 0x884   :  { %1746 = vpow2.f32 %v1588_v15  ;;  %v1589_v42 = vmul.f32 -1.442695, %v863_v22 }
 0x885   :  { %v860_v19 = vpop.f32.mrf.mxu0  ;;  %1748 = vtanh.f32 %v863_v22 }
 0x891   :  { %v1747_v23 = vpop.eup %1746 }
 0x892   :  { %v867_v24 = vadd.f32 1.0, %v1747_v23  ;;  %v1749_v25 = vpop.eup %1748 }
 0x894   :  { %1750 = vrcp.f32 %v867_v24  ;;  %v177_v24 = vadd.f32 %v2056_v47, %v1992_v30 }
 0x895   :  { %1752 = vpow2.f32 %v1589_v42 }
 0x8a1   :  { %v1751_v26 = vpop.eup %1750 }
 0x8a2   :  { %v882_v27 = vmul.f32 %v1751_v26, %v1749_v25  ;;  %v1753_v28 = vpop.eup %1752  ;;  %v881_v32 = vmul.f32 %v1751_v26, %v879_v29 }
 0x8a3   :  { %v874_v31 = vadd.f32 1.0, %v1753_v28 }
 0x8a4   :  { %884 = vrot.lane.b32.xlu1 %v882_v27, %s1841_s9 }
 0x8a5   :  { %1754 = vrcp.f32 %v874_v31 }
 0x8b2   :  { %v1755_v43 = vpop.eup %1754 }
 0x916   :  { %v885_v33 = vpop.permute.xlu1 %884 }
 0x917   :  { %v887_v34 = vadd.f32 %v885_v33, %v881_v32 }
 0x919   :  { %1756 = vtanh.f32 %v887_v34  ;;  %899 = vrot.lane.b32.xlu1 %v887_v34, %s1841_s9 }
 0x926   :  { %v1757_v35 = vpop.eup %1756 }
 0x927   :  { %v889_v36 = vmul.f32 %v1757_v35, %v1755_v43 }
 0x929   :  { %v1639_v37 = vpack.c.bf16 %v889_v36, %v889_v36 }
 0x92b   :  { %894 = vrot.lane.b32.xlu0 %v1639_v37, %s1841_s9 }
 0x98b   :  { %v900_v38 = vpop.permute.xlu1 %899 }
 0x98c   :  { %902 = vst.msk [vmem:[#allocation4] sm:$0xff] %vm201_vm1, %v900_v38 }
 0x993   :  { %v904_v39 = vld [vmem:[#allocation4] sm:$0xff] }
 0x994   :  { %1018 = vrot.lane.b32.xlu0 %v904_v39, %s1841_s9 }
 0x99d   :  { %v895_v50 = vpop.permute.xlu0 %894 }
 0x99e   :  { %897 = vst.msk [vmem:[#allocation3] sm:$0xf] %vm199_vm0, %v895_v50 }
 0x9a5   :  { %v903_v51 = vld [vmem:[#allocation3] sm:$0xf] }
 0x9a6   :  { %1599 = vmatmul.mubr.msk.bf16.vlgmr.msra.gmra.mxu1 %vm201_vm1, %v903_v51 }
 0x9a7   :  { %1250 = vmatpush1.bf16.msra.mxu1 %v1911_v4  ;;  %1273 = vmatprep.mubr.bf16.mxu1 %v1839_v1 }
 0x9a8   :  { %1251 = vmatprep.subr.bf16.mxu1 %v1921_v6 }
 0x9ab   :  { %1252 = vmatpush1.bf16.msra.mxu1 %v1929_v8 }
 0x9ac   :  { %1253 = vmatprep.subr.bf16.mxu1 %v1938_v10  ;;  %v171_v10 = vadd.f32 %v2052_v45, %v1992_v30 }
 0x9af   :  { %1254 = vmatpush1.bf16.msra.mxu1 %v1945_v11 }
 0x9b0   :  { %1255 = vmatprep.subr.bf16.mxu1 %v1952_v12 }
 0x9b3   :  { %1256 = vmatpush1.bf16.msra.mxu1 %v1957_v14 }
 0x9b4   :  { %1662 = vmatprep.subr.mxu1 %v1840_v2 }
 0xa06   :  { %v1019_v57 = vpop.permute.xlu0 %1018 }
 0xa66   :  { %v995_v4 = vpop.f32.mrf.mxu1 }
 0xa67   :  { %v1002_v40 = vadd.f32 %v995_v4, %v169_v3  ;;  %v179_v4 = vadd.f32 %v2058_v48, %v1988_v20  ;;  %v1694_v20 = vld [vmem:[%s2183_s4 + $0x18] sm:$0xff]   ;;  %v1695_v48 = vld [vmem:[%s2183_s4 + $0x10] sm:$0xff]  }
 0xa68   :  { %v997_v1 = vpop.f32.mrf.mxu1 }
 0xa69   :  { %v1600_v52 = vmul.f32 -1.442695, %v1002_v40  ;;  %v1003_v11 = vadd.f32 %v997_v1, %v171_v10 }
 0xa6a   :  { %v999_v6 = vpop.f32.mrf.mxu1 }
 0xa6b   :  { %1758 = vpow2.f32 %v1600_v52  ;;  %v1601_v44 = vmul.f32 -1.442695, %v1003_v11 }
 0xa6c   :  { %v1000_v8 = vpop.f32.mrf.mxu1  ;;  %1760 = vtanh.f32 %v1003_v11  ;;  %v181_v11 = vadd.f32 %v2060_v49, %v1992_v30 }
 0xa78   :  { %v1759_v53 = vpop.eup %1758 }
 0xa79   :  { %v1007_v12 = vadd.f32 1.0, %v1759_v53  ;;  %v1761_v14 = vpop.eup %1760 }
 0xa7b   :  { %1762 = vrcp.f32 %v1007_v12 }
 0xa7c   :  { %1764 = vpow2.f32 %v1601_v44 }
 0xa88   :  { %v1763_v54 = vpop.eup %1762 }
 0xa89   :  { %v1022_v55 = vmul.f32 %v1763_v54, %v1761_v14  ;;  %v1765_v56 = vpop.eup %1764  ;;  %v1021_v58 = vmul.f32 %v1763_v54, %v1019_v57 }
 0xa8a   :  { %v1014_v41 = vadd.f32 1.0, %v1765_v56 }
 0xa8b   :  { %1024 = vrot.lane.b32.xlu1 %v1022_v55, %s1841_s9 }
 0xa8c   :  { %1766 = vrcp.f32 %v1014_v41 }
 0xa99   :  { %v1767_v45 = vpop.eup %1766 }
 0xafd   :  { %v1025_v59 = vpop.permute.xlu1 %1024 }
 0xafe   :  { %v1027_v60 = vadd.f32 %v1025_v59, %v1021_v58 }
 0xb00   :  { %1768 = vtanh.f32 %v1027_v60  ;;  %1039 = vrot.lane.b32.xlu1 %v1027_v60, %s1841_s9  ;;  %v1696_v60 = vld [vmem:[%s2183_s4 + $0x8] sm:$0xff]  }
 0xb0d   :  { %v1769_v61 = vpop.eup %1768 }
 0xb0e   :  { %v1029_v62 = vmul.f32 %v1769_v61, %v1767_v45  ;;  %v1697_v45 = vld [vmem:[%s2183_s4] sm:$0xff]  }
 0xb10   :  { %v1640_v63 = vpack.c.bf16 %v1029_v62, %v1029_v62 }
 0xb12   :  { %1034 = vrot.lane.b32.xlu0 %v1640_v63, %s1841_s9 }
 0xb72   :  { %v1040_v0 = vpop.permute.xlu1 %1039 }
 0xb73   :  { %1042 = vst.msk [vmem:[#allocation4] sm:$0xff] %vm201_vm1, %v1040_v0 }
 0xb7a   :  { %v1044_v5 = vld [vmem:[#allocation4] sm:$0xff] }
 0xb7b   :  { %1158 = vrot.lane.b32.xlu0 %v1044_v5, %s1841_s9 }
 0xb84   :  { %v1035_v7 = vpop.permute.xlu0 %1034 }
 0xb85   :  { %1037 = vst.msk [vmem:[#allocation3] sm:$0xf] %vm199_vm0, %v1035_v7 }
 0xb8c   :  { %v1043_v9 = vld [vmem:[#allocation3] sm:$0xf] }
 0xb8d   :  { %1611 = vmatmul.mubr.msk.bf16.vlgmr.msra.gmra.mxu0 %vm201_vm1, %v1043_v9 }
 0xb8e   :  { %1651 = vmatpush3.bf16.msra.mxu0 %v1694_v20  ;;  %1658 = vmatprep.mubr.msk.bf16.mxu0 %vm1842_vm3, %v1840_v2 }
 0xb8f   :  { %1652 = vmatprep.subr.bf16.mxu0 %v1840_v2 }
 0xb92   :  { %1653 = vmatpush3.bf16.msra.mxu0 %v1695_v48 }
 0xb93   :  { %1654 = vmatprep.subr.bf16.mxu0 %v1840_v2 }
 0xb96   :  { %1655 = vmatpush3.bf16.msra.mxu0 %v1696_v60 }
 0xb97   :  { %1656 = vmatprep.subr.bf16.mxu0 %v1840_v2 }
 0xb9a   :  { %1657 = vmatpush3.bf16.msra.mxu0 %v1697_v45 }
 0xbed   :  { %v1159_v32 = vpop.permute.xlu0 %1158 }
 0xc4d   :  { %v1135_v15 = vpop.f32.mrf.mxu0 }
 0xc4e   :  { %v1142_v16 = vadd.f32 %v1135_v15, %v175_v13  ;;  %v1410_v13 = vld [vmem:[#allocation5] sm:$0x1] }
 0xc4f   :  { %v1137_v19 = vpop.f32.mrf.mxu0 }
 0xc50   :  { %v1612_v21 = vmul.f32 -1.442695, %v1142_v16  ;;  %v1143_v25 = vadd.f32 %v1137_v19, %v177_v24 }
 0xc51   :  { %v1139_v22 = vpop.f32.mrf.mxu0 }
 0xc52   :  { %1770 = vpow2.f32 %v1612_v21  ;;  %v1613_v46 = vmul.f32 -1.442695, %v1143_v25 }
 0xc53   :  { %v1140_v23 = vpop.f32.mrf.mxu0  ;;  %1772 = vtanh.f32 %v1143_v25  ;;  %v1409_v25 = vld [vmem:[%s2185_s6] sm:$0x1] }
 0xc5f   :  { %v1771_v26 = vpop.eup %1770 }
 0xc60   :  { %v1147_v27 = vadd.f32 1.0, %v1771_v26  ;;  %v1773_v42 = vpop.eup %1772 }
 0xc62   :  { %1774 = vrcp.f32 %v1147_v27 }
 0xc63   :  { %1776 = vpow2.f32 %v1613_v46 }
 0xc6f   :  { %v1775_v28 = vpop.eup %1774 }
 0xc70   :  { %v1162_v29 = vmul.f32 %v1775_v28, %v1773_v42  ;;  %v1777_v31 = vpop.eup %1776  ;;  %v1161_v34 = vmul.f32 %v1775_v28, %v1159_v32 }
 0xc71   :  { %v1154_v33 = vadd.f32 1.0, %v1777_v31 }
 0xc72   :  { %1164 = vrot.lane.b32.xlu1 %v1162_v29, %s1841_s9 }
 0xc73   :  { %1778 = vrcp.f32 %v1154_v33 }
 0xc80   :  { %v1779_v47 = vpop.eup %1778 }
 0xce4   :  { %v1165_v43 = vpop.permute.xlu1 %1164 }
 0xce5   :  { %v1167_v35 = vadd.f32 %v1165_v43, %v1161_v34 }
 0xce7   :  { %1780 = vtanh.f32 %v1167_v35  ;;  %1179 = vrot.lane.b32.xlu1 %v1167_v35, %s1841_s9 }
 0xcf4   :  { %v1781_v36 = vpop.eup %1780 }
 0xcf5   :  { %v1169_v37 = vmul.f32 %v1781_v36, %v1779_v47 }
 0xcf7   :  { %v1641_v38 = vpack.c.bf16 %v1169_v37, %v1169_v37 }
 0xcf9   :  { %1174 = vrot.lane.b32.xlu0 %v1641_v38, %s1841_s9 }
 0xd59   :  { %v1180_v39 = vpop.permute.xlu1 %1179 }
 0xd5a   :  { %1182 = vst.msk [vmem:[#allocation4] sm:$0xff] %vm201_vm1, %v1180_v39 }
 0xd61   :  { %v1184_v50 = vld [vmem:[#allocation4] sm:$0xff] }
 0xd62   :  { %1298 = vrot.lane.b32.xlu0 %v1184_v50, %s1841_s9 }
 0xd6b   :  { %v1175_v51 = vpop.permute.xlu0 %1174 }
 0xd6c   :  { %1177 = vst.msk [vmem:[#allocation3] sm:$0xf] %vm199_vm0, %v1175_v51 }
 0xd73   :  { %v1183_v3 = vld [vmem:[#allocation3] sm:$0xf] }
 0xd74   :  { %1623 = vmatmul.mubr.msk.bf16.vlgmr.msra.gmra.mxu1 %vm201_vm1, %v1183_v3 }
 0xd75   :  { %1664 = vmatprep.mubr.msk.f32.mxu1 %vm1842_vm3, %v1840_v2  ;;  %v1627_v2 = vld [vmem:[%s2184_s5] ss:$0 sm:$0xff]  ;;  %s1843_s5 = smov [#allocation9]  }
 0xd76   :  { %s1505_s23 = sshll.u32 %s1843_s5, 4  ;;  %s1506_s23 = int_to_ptr.vmem [resolvable:$true] %s1505_s23 }
 0xd77   :  { %s1814_s24 = scalar_lea.vmem %s1506_s23, 16  ;;  %s1818_s25 = scalar_lea.vmem %s1506_s23, 32 }
 0xd78   :  { %p1815_p5 = scmp.ne.s32.totalorder %s1506_s23, %s1814_s24  ;;  %p1819_p6 = scmp.lt.s32.totalorder %s1506_s23, %s1506_s23 }
 0xd79   :  { %p1820_p7 = scmp.lt.s32.totalorder %s1818_s25, %s1814_s24 }
 0xd7b   :  { %p1821_p8 = por %p1820_p7, %p1819_p6 }
 0xd7d   :  { %p1822_p9 = pnand %p1821_p8, %p1815_p5 }
 0xdd4   :  { %v1299_v56 = vpop.permute.xlu0 %1298 }
 0xe34   :  { %v1275_v40 = vpop.f32.mrf.mxu1 }
 0xe35   :  { %v1282_v1 = vadd.f32 %v1275_v40, %v179_v4 }
 0xe36   :  { %v1277_v52 = vpop.f32.mrf.mxu1 }
 0xe37   :  { %v1624_v6 = vmul.f32 -1.442695, %v1282_v1  ;;  %v1283_v53 = vadd.f32 %v1277_v52, %v181_v11 }
 0xe38   :  { %v1279_v8 = vpop.f32.mrf.mxu1 }
 0xe39   :  { %1782 = vpow2.f32 %v1624_v6  ;;  %v1625_v30 = vmul.f32 -1.442695, %v1283_v53 }
 0xe3a   :  { %v1280_v10 = vpop.f32.mrf.mxu1  ;;  %1784 = vtanh.f32 %v1283_v53 }
 0xe46   :  { %v1783_v12 = vpop.eup %1782 }
 0xe47   :  { %v1287_v14 = vadd.f32 1.0, %v1783_v12  ;;  %v1785_v54 = vpop.eup %1784 }
 0xe49   :  { %1786 = vrcp.f32 %v1287_v14 }
 0xe4a   :  { %1788 = vpow2.f32 %v1625_v30 }
 0xe56   :  { %v1787_v55 = vpop.eup %1786 }
 0xe57   :  { %v1302_v44 = vmul.f32 %v1787_v55, %v1785_v54  ;;  %v1789_v49 = vpop.eup %1788  ;;  %v1301_v41 = vmul.f32 %v1787_v55, %v1299_v56 }
 0xe58   :  { %v1294_v57 = vadd.f32 1.0, %v1789_v49 }
 0xe59   :  { %1304 = vrot.lane.b32.xlu1 %v1302_v44, %s1841_s9 }
 0xe5a   :  { %1790 = vrcp.f32 %v1294_v57 }
 0xe5d   :  { %1413 = vperm.xlu1 %1673, %v1410_v13  }
 0xe67   :  { %v1791_v61 = vpop.eup %1790 }
 0xecb   :  { %v1305_v58 = vpop.permute.xlu1 %1304 }
 0xecc   :  { %v1307_v59 = vadd.f32 %v1305_v58, %v1301_v41 }
 0xece   :  { %1792 = vtanh.f32 %v1307_v59 }
 0xed8   :  { %v1414_v26 = vpop.permute.xlu1 %1413 }
 0xed9   :  { %v1419_v27 = vrot.slane %v1414_v26, %v59_v18 }
 0xedb   :  { %v1793_v62 = vpop.eup %1792 }
 0xedc   :  { %v1309_v63 = vmul.f32 %v1793_v62, %v1791_v61 }
 0xede   :  { %v1642_v0 = vpack.c.bf16 %v1309_v63, %v1309_v63 }
 0xee0   :  { %1314 = vrot.lane.b32.xlu0 %v1642_v0, %s1841_s9 }
 0xee4   :  { %1319 = vrot.lane.b32.xlu0 %v1307_v59, %s1841_s9 }
 0xf52   :  { %v1315_v5 = vpop.permute.xlu0 %1314 }
 0xf53   :  { %1317 = vst.msk [vmem:[#allocation3] sm:$0xf] %vm199_vm0, %v1315_v5 }
 0xf56   :  { %v1320_v7 = vpop.permute.xlu0 %1319 }
 0xf57   :  { %1322 = vst.msk [vmem:[#allocation4] sm:$0xff] %vm201_vm1, %v1320_v7 }
 0xf5a   :  { %v1323_v9 = vld [vmem:[#allocation3] sm:$0xf] }
 0xf5b   :  { %1659 = vmatmul.mubr.msk.bf16.vlgmr.msra.gmra.mxu0 %vm201_vm1, %v1323_v9 }
0x101b   :  { %v1400_v15 = vpop.f32.mrf.mxu0 }
0x101c   :  { %v1401_v16 = vadd.f32 %v1627_v2, %v1400_v15 }
0x101d   :  { %v1660_v19 = vpop.f32.mrf.mxu0 }
0x101e   :  { %vm1406_vm4 = vcmp.gt.f32.partialorder %v1401_v16, 0.0  ;;  %v1407_v21 = vmul.f32 0.1, %v1401_v16 }
0x101f   :  { %v1403_v22 = vpop.f32.mrf.mxu0 }
0x1020   :  { %v1408_v23 = vsel %vm1406_vm4, %v1401_v16, %v1407_v21 }
0x1021   :  { %v1661_v24 = vpop.f32.mrf.mxu0  ;;  %1663 = vmatpush3.xpose.msk.msra.mxu1 %vm1420_vm5, %v1408_v23 }
0x1024   :  { %1665 = vmatmul.mubr.msk.f32.vlgmr.msra.gmra.mxu1 %vm1420_vm5, %v1409_v25 }
0x10e4   :  { %v1493_v42 = vpop.f32.mrf.mxu1 }
0x10e5   :  { %v1494_v28 = vadd.f32 %v1493_v42, %v1419_v27 }
0x10e6   :  { %v1666_v29 = vpop.f32.mrf.mxu1 }
0x10e7   :  { %1498 = vst.msk [vmem:[#allocation9] sm:$0x1] %vm1497_vm6, %v1494_v28 }
0x10e8   :  { %1825 = shalt.err (!%p1822_p9)
}
0x10e9   :  { %1508 = dma.vmem_to_hbm [thread:$0]  %s1506_s23, 16, %s2187_s8, [#allocation8]  }
0x10ea   :  { %1836 = dma.done.wait [#allocation8], 16  }
0x10eb   :  { %1837 = vsyncadd [#allocation8], 4294967280 }
0x10ec   :  { %1512 = vsyncpa [#allocation7], 1 }
0x10ed   :  { %1513 = vsyncpa [#allocation8], 1 }

</bundles_post_ra>
